<compile_context>
chip_gen: v6e
topology: v6e:2x2x1
jax: 0.10.0
libtpu: 0.0.40
codegen_flags: <defaults>
</compile_context>

<pallas_src>
import jax
import jax.numpy as jnp
from jax.experimental import pallas as pl
from jax.experimental.pallas import tpu as pltpu


def _vae_kernel(
    x_ref,       # (TB, input_dim)            f32/bf16  batch tile
    eps_ref,     # (TB, latent_dim)           f32       batch tile
    we_ref,      # (input_dim, hidden_dim)    bf16      encoder weight (transposed)
    be_ref,      # (1, hidden_dim)            f32
    wh_ref,      # (hidden_dim, 2*latent_dim) f32       fused mu|logvar heads (f32 for exp accuracy)
    bh_ref,      # (1, 2*latent_dim)          f32
    wd1_ref,     # (latent_dim, hidden_dim)   bf16      decoder layer 1 (transposed)
    bd1_ref,     # (1, hidden_dim)            f32
    wd2_ref,     # (hidden_dim, input_dim)    bf16      decoder layer 2 (transposed)
    bd2_ref,     # (1, input_dim)             f32
    xrec_ref,    # (TB, input_dim)            f32   out: reconstruction
    mu_ref,      # (TB, latent_dim)           f32   out: mu
    lv_ref,      # (TB, latent_dim)           f32   out: logvar
):
    latent_dim = eps_ref.shape[-1]

    x = x_ref[...]
    eps = eps_ref[...].astype(jnp.float32)

    # Encoder: Linear + ReLU (bf16 MXU operands, f32 accumulate).
    h = jnp.dot(x.astype(we_ref.dtype), we_ref[...],
                preferred_element_type=jnp.float32) + be_ref[...]
    h = jnp.maximum(h, 0.0)

    # Fused latent heads: single (hidden -> 2*latent) matmul, kept in f32 so the
    # subsequent exp(0.5*logvar) does not amplify bf16 operand error.
    mulv = jnp.dot(h, wh_ref[...], preferred_element_type=jnp.float32) + bh_ref[...]
    mu = mulv[:, :latent_dim]
    logvar = mulv[:, latent_dim:]

    # Reparameterize: z = mu + eps * exp(0.5 * logvar)   (f32 VPU/EUP math)
    z = mu + eps * jnp.exp(0.5 * logvar)

    # Decoder: Linear + ReLU, Linear + ReLU.
    d1 = jnp.dot(z.astype(wd1_ref.dtype), wd1_ref[...],
                 preferred_element_type=jnp.float32) + bd1_ref[...]
    d1 = jnp.maximum(d1, 0.0)
    d2 = jnp.dot(d1.astype(wd2_ref.dtype), wd2_ref[...],
                 preferred_element_type=jnp.float32) + bd2_ref[...]

    xrec_ref[...] = jnp.maximum(d2, 0.0).astype(xrec_ref.dtype)
    mu_ref[...] = mu.astype(mu_ref.dtype)
    lv_ref[...] = logvar.astype(lv_ref.dtype)


def prepare_params(params, compute_dtype=jnp.bfloat16):
    """One-time param prep (hoisted out of the per-call path): transpose weights to
    (in, out), lift biases to (1, out), fuse the mu/logvar heads, cast the large
    encoder/decoder matmul operands to bf16 (head stays f32). Reuse across calls."""
    we = params["enc_w"].T.astype(compute_dtype)
    be = params["enc_b"].reshape(1, -1).astype(jnp.float32)
    wh = jnp.concatenate([params["mu_w"].T, params["lv_w"].T], axis=1).astype(jnp.float32)
    bh = jnp.concatenate([params["mu_b"], params["lv_b"]]).reshape(1, -1).astype(jnp.float32)
    wd1 = params["dec1_w"].T.astype(compute_dtype)
    bd1 = params["dec1_b"].reshape(1, -1).astype(jnp.float32)
    wd2 = params["dec2_w"].T.astype(compute_dtype)
    bd2 = params["dec2_b"].reshape(1, -1).astype(jnp.float32)
    return (we, be, wh, bh, wd1, bd1, wd2, bd2)


def _round_up(x, m):
    return ((x + m - 1) // m) * m


def _choose_tb(B, tb=None):
    """Pick the batch tile: large enough to amortize per-grid-step overhead, a
    multiple of 256 (v6e/v7x MXU rows), capped so the grid keeps >= 2 steps when
    B allows (second TensorCore on v7x), and sublane-aligned (multiple of 8)."""
    if tb is None:
        tb = min(1024, _round_up(pl.cdiv(B, 2), 256))
    tb = max(8, min(_round_up(tb, 8), _round_up(B, 8)))
    return tb


def vae_forward(x, prepared, eps, *, tb=None):
    """Run the VAE forward pass in one batch-tiled Pallas call.

    x:        (B, input_dim) f32 (or bf16 — it is only ever an MXU operand)
    prepared: output of prepare_params()
    eps:      (B, latent_dim) f32 standard-normal noise
    Returns (x_recon, mu, logvar), all f32.
    """
    we, be, wh, bh, wd1, bd1, wd2, bd2 = prepared
    B, input_dim = x.shape
    latent_dim = eps.shape[1]
    hidden_dim = we.shape[1]

    tb = _choose_tb(B, tb)
    grid = (pl.cdiv(B, tb),)   # ragged last tile handled by Pallas; no jnp.pad pass.

    def resident(arr):
        # Weight/bias stays VMEM-resident: constant block index across batch tiles.
        return pl.BlockSpec(arr.shape, lambda i: (0, 0))

    weights = (we, be, wh, bh, wd1, bd1, wd2, bd2)

    # VMEM budget: double-buffered x/eps/outputs tiles + (double-buffered) resident
    # weights, with 2x margin + 4 MiB slack, capped at 64 MiB (valid on v7x too).
    tile_bytes = (
        tb * input_dim * x.dtype.itemsize          # x tile
        + tb * latent_dim * eps.dtype.itemsize     # eps tile
        + tb * input_dim * 4                       # x_recon tile
        + 2 * tb * latent_dim * 4                  # mu + logvar tiles
    )
    weight_bytes = sum(int(w.size) * w.dtype.itemsize for w in weights)
    footprint = 2 * (tile_bytes + weight_bytes)
    vmem_limit = int(min(64 << 20, max(32 << 20, 2 * footprint + (4 << 20))))

    # Advisory cost estimate so XLA can schedule this small call against neighbors.
    flops = 2 * B * (input_dim * hidden_dim + hidden_dim * 2 * latent_dim
                     + latent_dim * hidden_dim + hidden_dim * input_dim)
    bytes_accessed = (x.size * x.dtype.itemsize + eps.size * eps.dtype.itemsize
                      + B * input_dim * 4 + 2 * B * latent_dim * 4 + weight_bytes)
    cost = pl.CostEstimate(flops=int(flops), transcendentals=int(B * latent_dim),
                           bytes_accessed=int(bytes_accessed))

    x_recon, mu, logvar = pl.pallas_call(
        _vae_kernel,
        grid=grid,
        in_specs=[
            pl.BlockSpec((tb, input_dim), lambda i: (i, 0)),    # x
            pl.BlockSpec((tb, latent_dim), lambda i: (i, 0)),   # eps
            resident(we), resident(be),
            resident(wh), resident(bh),
            resident(wd1), resident(bd1),
            resident(wd2), resident(bd2),
        ],
        out_specs=(
            pl.BlockSpec((tb, input_dim), lambda i: (i, 0)),    # x_recon
            pl.BlockSpec((tb, latent_dim), lambda i: (i, 0)),   # mu
            pl.BlockSpec((tb, latent_dim), lambda i: (i, 0)),   # logvar
        ),
        out_shape=(
            jax.ShapeDtypeStruct((B, input_dim), jnp.float32),
            jax.ShapeDtypeStruct((B, latent_dim), jnp.float32),
            jax.ShapeDtypeStruct((B, latent_dim), jnp.float32),
        ),
        compiler_params=pltpu.CompilerParams(
            dimension_semantics=("parallel",),
            vmem_limit_bytes=vmem_limit),
        cost_estimate=cost,
    )(x, eps, we, be, wh, bh, wd1, bd1, wd2, bd2)

    return x_recon, mu, logvar


def init_params(key, input_dim, hidden_dim, latent_dim):
    """Deterministic parameter init (PyTorch Linear layout: W (out,in), b (out,))."""
    ks = jax.random.split(key, 10)

    def lin(kw, kb, fan_in, fan_out):
        bound = 1.0 / jnp.sqrt(fan_in)
        w = jax.random.uniform(kw, (fan_out, fan_in), jnp.float32, -bound, bound)
        b = jax.random.uniform(kb, (fan_out,), jnp.float32, -bound, bound)
        return w, b

    enc_w, enc_b = lin(ks[0], ks[1], input_dim, hidden_dim)
    mu_w, mu_b = lin(ks[2], ks[3], hidden_dim, latent_dim)
    lv_w, lv_b = lin(ks[4], ks[5], hidden_dim, latent_dim)
    dec1_w, dec1_b = lin(ks[6], ks[7], latent_dim, hidden_dim)
    dec2_w, dec2_b = lin(ks[8], ks[9], hidden_dim, input_dim)

    return {
        "enc_w": enc_w, "enc_b": enc_b,
        "mu_w": mu_w, "mu_b": mu_b,
        "lv_w": lv_w, "lv_b": lv_b,
        "dec1_w": dec1_w, "dec1_b": dec1_b,
        "dec2_w": dec2_w, "dec2_b": dec2_b,
    }


def vae_forward_ref(x, params, eps):
    """Pure-JAX f32 reference (matches the PyTorch module, eps injected)."""
    h = jnp.maximum(x @ params["enc_w"].T + params["enc_b"], 0.0)
    mu = h @ params["mu_w"].T + params["mu_b"]
    logvar = h @ params["lv_w"].T + params["lv_b"]
    z = mu + eps * jnp.exp(0.5 * logvar)
    d1 = jnp.maximum(z @ params["dec1_w"].T + params["dec1_b"], 0.0)
    x_recon = jnp.maximum(d1 @ params["dec2_w"].T + params["dec2_b"], 0.0)
    return x_recon, mu, logvar


if __name__ == "__main__":
    # Small shapes that still exercise two batch tiles (grid=(2,)): B=512 -> tb=256.
    B, input_dim, hidden_dim, latent_dim = 512, 32, 64, 16

    key = jax.random.PRNGKey(0)
    k_x, k_eps, k_p = jax.random.split(key, 3)

    x = jax.random.normal(k_x, (B, input_dim), jnp.float32)
    eps = jax.random.normal(k_eps, (B, latent_dim), jnp.float32)
    params = init_params(k_p, input_dim, hidden_dim, latent_dim)

    # One-time parameter prep (transpose / fuse / bf16-cast), reused across calls.
    prepared = prepare_params(params)

    x_recon, mu, logvar = vae_forward(x, prepared, eps)
    jax.block_until_ready((x_recon, mu, logvar))

    # Correctness vs pure-f32 reference. Encoder/decoder matmuls use bf16 MXU
    # operands (f32 accumulation); mu/logvar head is full f32, so mu/logvar are
    # tight and x_recon errors stay at the ~1% level.
    r_recon, r_mu, r_lv = vae_forward_ref(x, params, eps)
    assert jnp.allclose(mu, r_mu, atol=2e-2, rtol=2e-2), "mu mismatch"
    assert jnp.allclose(logvar, r_lv, atol=2e-2, rtol=2e-2), "logvar mismatch"
    assert jnp.allclose(x_recon, r_recon, atol=5e-2, rtol=5e-2), "x_recon mismatch"

    print("KERNEL_OK")
</pallas_src>

<mosaic_0001>
module attributes {stable_mosaic.version = 11 : i64} {
  func.func @_vae_kernel(%arg0: i32, %arg1: memref<256x32xf32, #tpu.memory_space<vmem>>, %arg2: memref<256x16xf32, #tpu.memory_space<vmem>>, %arg3: memref<32x64xbf16, #tpu.memory_space<vmem>>, %arg4: memref<1x64xf32, #tpu.memory_space<vmem>>, %arg5: memref<64x32xf32, #tpu.memory_space<vmem>>, %arg6: memref<1x32xf32, #tpu.memory_space<vmem>>, %arg7: memref<16x64xbf16, #tpu.memory_space<vmem>>, %arg8: memref<1x64xf32, #tpu.memory_space<vmem>>, %arg9: memref<64x32xbf16, #tpu.memory_space<vmem>>, %arg10: memref<1x32xf32, #tpu.memory_space<vmem>>, %arg11: memref<256x32xf32, #tpu.memory_space<vmem>>, %arg12: memref<256x16xf32, #tpu.memory_space<vmem>>, %arg13: memref<256x16xf32, #tpu.memory_space<vmem>>) attributes {dimension_semantics = [#tpu.dimension_semantics<parallel>], iteration_bounds = array<i64: 2>, scalar_prefetch = 0 : i64, scratch_operands = 0 : i64, tpu.core_type = #tpu.core_type<tc>, window_params = [{transform_indices = @transform_0, window_bounds = array<i64: 256, 32>}, {transform_indices = @transform_1, window_bounds = array<i64: 256, 16>}, {pipeline_mode = #tpu.pipeline_mode<synchronous>, transform_indices = @transform_2, window_bounds = array<i64: 32, 64>}, {pipeline_mode = #tpu.pipeline_mode<synchronous>, transform_indices = @transform_3, window_bounds = array<i64: 1, 64>}, {pipeline_mode = #tpu.pipeline_mode<synchronous>, transform_indices = @transform_4, window_bounds = array<i64: 64, 32>}, {pipeline_mode = #tpu.pipeline_mode<synchronous>, transform_indices = @transform_5, window_bounds = array<i64: 1, 32>}, {pipeline_mode = #tpu.pipeline_mode<synchronous>, transform_indices = @transform_6, window_bounds = array<i64: 16, 64>}, {pipeline_mode = #tpu.pipeline_mode<synchronous>, transform_indices = @transform_7, window_bounds = array<i64: 1, 64>}, {pipeline_mode = #tpu.pipeline_mode<synchronous>, transform_indices = @transform_8, window_bounds = array<i64: 64, 32>}, {pipeline_mode = #tpu.pipeline_mode<synchronous>, transform_indices = @transform_9, window_bounds = array<i64: 1, 32>}, {transform_indices = @transform_10, window_bounds = array<i64: 256, 32>}, {transform_indices = @transform_11, window_bounds = array<i64: 256, 16>}, {transform_indices = @transform_12, window_bounds = array<i64: 256, 16>}]} {
    %c0 = arith.constant 0 : index
    %c0_0 = arith.constant 0 : index
    %0 = vector.load %arg1[%c0, %c0_0] : memref<256x32xf32, #tpu.memory_space<vmem>>, vector<256x32xf32>
    %c0_1 = arith.constant 0 : index
    %c0_2 = arith.constant 0 : index
    %1 = vector.load %arg2[%c0_1, %c0_2] : memref<256x16xf32, #tpu.memory_space<vmem>>, vector<256x16xf32>
    %2 = arith.truncf %0 : vector<256x32xf32> to vector<256x32xbf16>
    %c0_3 = arith.constant 0 : index
    %c0_4 = arith.constant 0 : index
    %3 = vector.load %arg3[%c0_3, %c0_4] : memref<32x64xbf16, #tpu.memory_space<vmem>>, vector<32x64xbf16>
    %cst = arith.constant dense<0.000000e+00> : vector<256x64xf32>
    %4 = tpu.matmul %2, %3, %cst {dimension_numbers = #tpu.dot_dimension_numbers<[1], [0], [0], [1], [0, 0, 1, 1], [], []>} : vector<256x32xbf16>, vector<32x64xbf16>, vector<256x64xf32> -> vector<256x64xf32>
    %c0_5 = arith.constant 0 : index
    %c0_6 = arith.constant 0 : index
    %5 = vector.load %arg4[%c0_5, %c0_6] : memref<1x64xf32, #tpu.memory_space<vmem>>, vector<1x64xf32>
    %6 = vector.broadcast %5 : vector<1x64xf32> to vector<256x64xf32>
    %7 = arith.addf %4, %6 : vector<256x64xf32>
    %cst_7 = arith.constant 0.000000e+00 : f32
    %8 = vector.broadcast %cst_7 : f32 to vector<256x64xf32>
    %9 = arith.maximumf %7, %8 : vector<256x64xf32>
    %c0_8 = arith.constant 0 : index
    %c0_9 = arith.constant 0 : index
    %10 = vector.load %arg5[%c0_8, %c0_9] : memref<64x32xf32, #tpu.memory_space<vmem>>, vector<64x32xf32>
    %cst_10 = arith.constant dense<0.000000e+00> : vector<256x32xf32>
    %11 = tpu.matmul %9, %10, %cst_10 {dimension_numbers = #tpu.dot_dimension_numbers<[1], [0], [0], [1], [0, 0, 1, 1], [], []>} : vector<256x64xf32>, vector<64x32xf32>, vector<256x32xf32> -> vector<256x32xf32>
    %c0_11 = arith.constant 0 : index
    %c0_12 = arith.constant 0 : index
    %12 = vector.load %arg6[%c0_11, %c0_12] : memref<1x32xf32, #tpu.memory_space<vmem>>, vector<1x32xf32>
    %13 = vector.broadcast %12 : vector<1x32xf32> to vector<256x32xf32>
    %14 = arith.addf %11, %13 : vector<256x32xf32>
    %15 = vector.extract_strided_slice %14 {offsets = [0, 0], sizes = [256, 16], strides = [1, 1]} : vector<256x32xf32> to vector<256x16xf32>
    %16 = vector.extract_strided_slice %14 {offsets = [0, 16], sizes = [256, 16], strides = [1, 1]} : vector<256x32xf32> to vector<256x16xf32>
    %cst_13 = arith.constant 5.000000e-01 : f32
    %17 = vector.broadcast %cst_13 : f32 to vector<256x16xf32>
    %18 = arith.mulf %17, %16 : vector<256x16xf32>
    %19 = math.exp %18 : vector<256x16xf32>
    %20 = arith.mulf %1, %19 : vector<256x16xf32>
    %21 = arith.addf %15, %20 : vector<256x16xf32>
    %22 = arith.truncf %21 : vector<256x16xf32> to vector<256x16xbf16>
    %c0_14 = arith.constant 0 : index
    %c0_15 = arith.constant 0 : index
    %23 = vector.load %arg7[%c0_14, %c0_15] : memref<16x64xbf16, #tpu.memory_space<vmem>>, vector<16x64xbf16>
    %cst_16 = arith.constant dense<0.000000e+00> : vector<256x64xf32>
    %24 = tpu.matmul %22, %23, %cst_16 {dimension_numbers = #tpu.dot_dimension_numbers<[1], [0], [0], [1], [0, 0, 1, 1], [], []>} : vector<256x16xbf16>, vector<16x64xbf16>, vector<256x64xf32> -> vector<256x64xf32>
    %c0_17 = arith.constant 0 : index
    %c0_18 = arith.constant 0 : index
    %25 = vector.load %arg8[%c0_17, %c0_18] : memref<1x64xf32, #tpu.memory_space<vmem>>, vector<1x64xf32>
    %26 = vector.broadcast %25 : vector<1x64xf32> to vector<256x64xf32>
    %27 = arith.addf %24, %26 : vector<256x64xf32>
    %cst_19 = arith.constant 0.000000e+00 : f32
    %28 = vector.broadcast %cst_19 : f32 to vector<256x64xf32>
    %29 = arith.maximumf %27, %28 : vector<256x64xf32>
    %30 = arith.truncf %29 : vector<256x64xf32> to vector<256x64xbf16>
    %c0_20 = arith.constant 0 : index
    %c0_21 = arith.constant 0 : index
    %31 = vector.load %arg9[%c0_20, %c0_21] : memref<64x32xbf16, #tpu.memory_space<vmem>>, vector<64x32xbf16>
    %cst_22 = arith.constant dense<0.000000e+00> : vector<256x32xf32>
    %32 = tpu.matmul %30, %31, %cst_22 {dimension_numbers = #tpu.dot_dimension_numbers<[1], [0], [0], [1], [0, 0, 1, 1], [], []>} : vector<256x64xbf16>, vector<64x32xbf16>, vector<256x32xf32> -> vector<256x32xf32>
    %c0_23 = arith.constant 0 : index
    %c0_24 = arith.constant 0 : index
    %33 = vector.load %arg10[%c0_23, %c0_24] : memref<1x32xf32, #tpu.memory_space<vmem>>, vector<1x32xf32>
    %34 = vector.broadcast %33 : vector<1x32xf32> to vector<256x32xf32>
    %35 = arith.addf %32, %34 : vector<256x32xf32>
    %cst_25 = arith.constant 0.000000e+00 : f32
    %36 = vector.broadcast %cst_25 : f32 to vector<256x32xf32>
    %37 = arith.maximumf %35, %36 : vector<256x32xf32>
    %c0_26 = arith.constant 0 : index
    %c0_27 = arith.constant 0 : index
    %38 = vector.load %arg11[%c0_26, %c0_27] : memref<256x32xf32, #tpu.memory_space<vmem>>, vector<256x32xf32>
    tpu.vector_store %arg11[%c0_26, %c0_27], %37 {strides = array<i32>} : memref<256x32xf32, #tpu.memory_space<vmem>>, vector<256x32xf32>,
    %c0_28 = arith.constant 0 : index
    %c0_29 = arith.constant 0 : index
    %39 = vector.load %arg12[%c0_28, %c0_29] : memref<256x16xf32, #tpu.memory_space<vmem>>, vector<256x16xf32>
    tpu.vector_store %arg12[%c0_28, %c0_29], %15 {strides = array<i32>} : memref<256x16xf32, #tpu.memory_space<vmem>>, vector<256x16xf32>,
    %c0_30 = arith.constant 0 : index
    %c0_31 = arith.constant 0 : index
    %40 = vector.load %arg13[%c0_30, %c0_31] : memref<256x16xf32, #tpu.memory_space<vmem>>, vector<256x16xf32>
    tpu.vector_store %arg13[%c0_30, %c0_31], %16 {strides = array<i32>} : memref<256x16xf32, #tpu.memory_space<vmem>>, vector<256x16xf32>,
    return
  }
  func.func @transform_0(%arg0: i32) -> (i32, i32) {
    %c0_i32 = arith.constant 0 : i32
    %c0_i32_0 = arith.constant 0 : i32
    return %arg0, %c0_i32 : i32, i32
  }
  func.func @transform_1(%arg0: i32) -> (i32, i32) {
    %c0_i32 = arith.constant 0 : i32
    %c0_i32_0 = arith.constant 0 : i32
    return %arg0, %c0_i32 : i32, i32
  }
  func.func @transform_2(%arg0: i32) -> (i32, i32) {
    %c0_i32 = arith.constant 0 : i32
    %c0_i32_0 = arith.constant 0 : i32
    %c0_i32_1 = arith.constant 0 : i32
    return %c0_i32, %c0_i32_0 : i32, i32
  }
  func.func @transform_3(%arg0: i32) -> (i32, i32) {
    %c0_i32 = arith.constant 0 : i32
    %c0_i32_0 = arith.constant 0 : i32
    %c0_i32_1 = arith.constant 0 : i32
    return %c0_i32, %c0_i32_0 : i32, i32
  }
  func.func @transform_4(%arg0: i32) -> (i32, i32) {
    %c0_i32 = arith.constant 0 : i32
    %c0_i32_0 = arith.constant 0 : i32
    %c0_i32_1 = arith.constant 0 : i32
    return %c0_i32, %c0_i32_0 : i32, i32
  }
  func.func @transform_5(%arg0: i32) -> (i32, i32) {
    %c0_i32 = arith.constant 0 : i32
    %c0_i32_0 = arith.constant 0 : i32
    %c0_i32_1 = arith.constant 0 : i32
    return %c0_i32, %c0_i32_0 : i32, i32
  }
  func.func @transform_6(%arg0: i32) -> (i32, i32) {
    %c0_i32 = arith.constant 0 : i32
    %c0_i32_0 = arith.constant 0 : i32
    %c0_i32_1 = arith.constant 0 : i32
    return %c0_i32, %c0_i32_0 : i32, i32
  }
  func.func @transform_7(%arg0: i32) -> (i32, i32) {
    %c0_i32 = arith.constant 0 : i32
    %c0_i32_0 = arith.constant 0 : i32
    %c0_i32_1 = arith.constant 0 : i32
    return %c0_i32, %c0_i32_0 : i32, i32
  }
  func.func @transform_8(%arg0: i32) -> (i32, i32) {
    %c0_i32 = arith.constant 0 : i32
    %c0_i32_0 = arith.constant 0 : i32
    %c0_i32_1 = arith.constant 0 : i32
    return %c0_i32, %c0_i32_0 : i32, i32
  }
  func.func @transform_9(%arg0: i32) -> (i32, i32) {
    %c0_i32 = arith.constant 0 : i32
    %c0_i32_0 = arith.constant 0 : i32
    %c0_i32_1 = arith.constant 0 : i32
    return %c0_i32, %c0_i32_0 : i32, i32
  }
  func.func @transform_10(%arg0: i32) -> (i32, i32) {
    %c0_i32 = arith.constant 0 : i32
    %c0_i32_0 = arith.constant 0 : i32
    return %arg0, %c0_i32 : i32, i32
  }
  func.func @transform_11(%arg0: i32) -> (i32, i32) {
    %c0_i32 = arith.constant 0 : i32
    %c0_i32_0 = arith.constant 0 : i32
    return %arg0, %c0_i32 : i32, i32
  }
  func.func @transform_12(%arg0: i32) -> (i32, i32) {
    %c0_i32 = arith.constant 0 : i32
    %c0_i32_0 = arith.constant 0 : i32
    return %arg0, %c0_i32 : i32, i32
  }
}

</mosaic_0001>

<bundles_post_ra>
// kernel: tpu_custom_call.1
= control target key start
LH: loop header
LB: loop body
LE: loop exit
PB: predicated region body
PF: predicated region fallthrough
CT: control target
= control target key end

     0   :  { %s2913_s21 = smov 0   ;;  %s3741_s0 = inlined_call_operand.vmem [shape: f32[512,32], index: 0, kind: input, shape index: {}]   ;;  %s3742_s1 = inlined_call_operand.vmem [shape: f32[512,16], index: 1, kind: input, shape index: {}]   ;;  %s3743_s2 = inlined_call_operand.vmem [shape: bf16[32,64], index: 2, kind: input, shape index: {}]   ;;  %s3744_s3 = inlined_call_operand.vmem [shape: f32[1,64], index: 3, kind: input, shape index: {}]   ;;  %s3745_s4 = inlined_call_operand.vmem [shape: f32[64,32], index: 4, kind: input, shape index: {}]   ;;  %s3746_s5 = inlined_call_operand.vmem [shape: f32[1,32], index: 5, kind: input, shape index: {}]   ;;  %s3747_s6 = inlined_call_operand.vmem [shape: bf16[16,64], index: 6, kind: input, shape index: {}]   ;;  %s3748_s7 = inlined_call_operand.vmem [shape: f32[1,64], index: 7, kind: input, shape index: {}]   ;;  %s3749_s8 = inlined_call_operand.vmem [shape: bf16[64,32], index: 8, kind: input, shape index: {}]   ;;  %s3750_s9 = inlined_call_operand.vmem [shape: f32[1,32], index: 9, kind: input, shape index: {}]   ;;  %s3751_s10 = inlined_call_operand.vmem [shape: f32[512,32], index: 10, kind: output, shape index: {0}]   ;;  %s3752_s11 = inlined_call_operand.vmem [shape: f32[512,16], index: 11, kind: output, shape index: {1}]   ;;  %s3753_s12 = inlined_call_operand.vmem [shape: f32[512,16], index: 12, kind: output, shape index: {2}]  }
   0x1 LB: > { %s2366_s22 = sadd.s32 4294967295, %s2845_s21   ;;  %p2370_p0 = scmp.ge.s32.totalorder %s2845_s21, 1  ;;  %s2845_s21 = sphi %s2913_s21, %s23_s21  }
   0x2   : > { %p379_p1 = scmp.lt.s32.totalorder %s2845_s21, 3 }
   0x4   : > { %p380_p2 = pnand %p2370_p0, %p379_p1 }
   0x5   : > { %s2371_s25 = sshll.u32 (!%p380_p2), %s2366_s22, 5  ;;  %s2847_s24 = smov (!%p380_p2), 112  }
   0x6   : > { %383 = sbr.rel (%p380_p2) target bundleno = 1030 (0x406), region = 60  ;;  %p437_p3 = scmp.lt.s32.totalorder (!%p380_p2), %s2371_s25, 63 }
   0xb   : > { %v2768_v0 = vld [vmem:[%s3743_s2 + $0x8] sm:$0xff]   ;;  %v2769_v1 = vld [vmem:[%s3743_s2] sm:$0xff]   ;;  %v819_v2 = vld [vmem:[%s3745_s4 + $0x38] sm:$0xff]  ;;  %s3755_s25 = smov (!%p437_p3, %s2371_s25), 63  ;;  %vm570_vm0 = vcmask 261120   ;;  %vm827_vm1 = vcmask 523264  }
   0xc   : > { %2569 = vmatprep.subr.bf16.mxu0 %v2768_v0  ;;  %v818_v3 = vld [vmem:[%s3745_s4 + $0x30] sm:$0xff]  ;;  %2743 = vmatprep.subr.mxu1 %v819_v2  ;;  %v817_v4 = vld [vmem:[%s3745_s4 + $0x28] sm:$0xff]  ;;  %s2936_s16 = sshll.u32 %s3755_s25, 3  ;;  %v816_v5 = vld [vmem:[%s3745_s4 + $0x20] sm:$0xff]  ;;  %vm1468_vm2 = vcmask 130048  }
   0xd   : > { %2570 = vmatpush3.bf16.msra.mxu0 %v2768_v0  ;;  %2751 = vmatpush3.msra.mxu1 %v819_v2  ;;  %s2945_s22 = scalar_lea.vmem %s3741_s0, %s2936_s16  ;;  %v815_v6 = vld [vmem:[%s3745_s4 + $0x18] sm:$0xff]  ;;  %v814_v16 = vld [vmem:[%s3745_s4 + $0x10] sm:$0xff]  ;;  %v813_v21 = vld [vmem:[%s3745_s4 + $0x8] sm:$0xff]  ;;  %s3085_s20 = scalar_lea.vmem %s3752_s11, %s2936_s16 }
   0xe   : > { %2571 = vmatprep.subr.bf16.mxu0 %v2769_v1  ;;  %2744 = vmatprep.subr.mxu1 %v818_v3  ;;  %v467_v7 = vld [vmem:[%s2945_s22] sm:$0xff]  ;;  %v468_v8 = vld [vmem:[%s2945_s22 + $0x8] sm:$0xff]  ;;  %v469_v9 = vld [vmem:[%s2945_s22 + $0x10] sm:$0xff]  ;;  %s3406_s13 = scalar_lea.vmem %s3742_s1, %s2936_s16  ;;  %s3641_s29 = scalar_lea.vmem %s3751_s10, %s2936_s16 }
   0xf   : > { %2752 = vmatpush3.msra.mxu1 %v818_v3  ;;  %v531_v10 = vpack.c.bf16 %v468_v8, %v467_v7  ;;  %v470_v11 = vld [vmem:[%s2945_s22 + $0x18] sm:$0xff]  ;;  %v471_v12 = vld [vmem:[%s2945_s22 + $0x20] sm:$0xff]  ;;  %v472_v13 = vld [vmem:[%s2945_s22 + $0x28] sm:$0xff] }
  0x10   : > { %2745 = vmatprep.subr.mxu1 %v817_v4  ;;  %v532_v14 = vpack.c.bf16 %v470_v11, %v469_v9  ;;  %v533_v15 = vpack.c.bf16 %v472_v13, %v471_v12  ;;  %v473_v17 = vld [vmem:[%s2945_s22 + $0x30] sm:$0xff]  ;;  %v474_v18 = vld [vmem:[%s2945_s22 + $0x38] sm:$0xff]  ;;  %v475_v19 = vld [vmem:[%s2945_s22 + $0x40] sm:$0xff] }
  0x11   : > { %2572 = vmatpush3.bf16.msra.mxu0 %v2769_v1  ;;  %2753 = vmatpush3.msra.mxu1 %v817_v4  ;;  %v476_v20 = vld [vmem:[%s2945_s22 + $0x48] sm:$0xff]  ;;  %v534_v22 = vpack.c.bf16 %v474_v18, %v473_v17  ;;  %v477_v24 = vld [vmem:[%s2945_s22 + $0x50] sm:$0xff]  ;;  %v478_v25 = vld [vmem:[%s2945_s22 + $0x58] sm:$0xff] }
  0x12   : > { %2605 = vmatprep.subr.mxu0 %v819_v2  ;;  %2746 = vmatprep.subr.mxu1 %v816_v5  ;;  %v535_v23 = vpack.c.bf16 %v476_v20, %v475_v19  ;;  %v479_v26 = vld [vmem:[%s2945_s22 + $0x60] sm:$0xff]  ;;  %v480_v27 = vld [vmem:[%s2945_s22 + $0x68] sm:$0xff]  ;;  %v536_v28 = vpack.c.bf16 %v478_v25, %v477_v24  ;;  %v481_v30 = vld [vmem:[%s2945_s22 + $0x70] sm:$0xff] }
  0x13   : > { %2573 = vmatprep.mubr.msk.bf16.mxu0 %vm570_vm0, %v531_v10  ;;  %2754 = vmatpush3.msra.mxu1 %v816_v5  ;;  %v537_v29 = vpack.c.bf16 %v480_v27, %v479_v26  ;;  %v482_v31 = vld [vmem:[%s2945_s22 + $0x78] sm:$0xff]  ;;  %v483_v32 = vld [vmem:[%s2945_s22 + $0x80] sm:$0xff]  ;;  %v484_v33 = vld [vmem:[%s2945_s22 + $0x88] sm:$0xff] }
  0x14   : > { %2574 = vmatmul.mubr.msk.bf16.vlgmr.msra.gmra.mxu0 %vm570_vm0, %v532_v14  ;;  %2747 = vmatprep.subr.mxu1 %v815_v6  ;;  %v538_v34 = vpack.c.bf16 %v482_v31, %v481_v30  ;;  %v539_v35 = vpack.c.bf16 %v484_v33, %v483_v32  ;;  %v485_v36 = vld [vmem:[%s2945_s22 + $0x90] sm:$0xff]  ;;  %v486_v37 = vld [vmem:[%s2945_s22 + $0x98] sm:$0xff]  ;;  %v487_v38 = vld [vmem:[%s2945_s22 + $0xa0] sm:$0xff] }
  0x15   : > { %2577 = vmatprep.mubr.msk.bf16.mxu0 %vm570_vm0, %v533_v15  ;;  %2606 = vmatpush3.msra.mxu0 %v819_v2  ;;  %v488_v39 = vld [vmem:[%s2945_s22 + $0xa8] sm:$0xff]  ;;  %v540_v40 = vpack.c.bf16 %v486_v37, %v485_v36  ;;  %v489_v42 = vld [vmem:[%s2945_s22 + $0xb0] sm:$0xff]  ;;  %v490_v43 = vld [vmem:[%s2945_s22 + $0xb8] sm:$0xff] }
  0x16   : > { %2607 = vmatprep.subr.mxu0 %v818_v3  ;;  %2755 = vmatpush3.msra.mxu1 %v815_v6  ;;  %v541_v41 = vpack.c.bf16 %v488_v39, %v487_v38  ;;  %v491_v44 = vld [vmem:[%s2945_s22 + $0xc0] sm:$0xff]  ;;  %v492_v45 = vld [vmem:[%s2945_s22 + $0xc8] sm:$0xff]  ;;  %v542_v46 = vpack.c.bf16 %v490_v43, %v489_v42  ;;  %v493_v48 = vld [vmem:[%s2945_s22 + $0xd0] sm:$0xff] }
  0x17   : > { %2608 = vmatpush3.msra.mxu0 %v818_v3  ;;  %2748 = vmatprep.subr.mxu1 %v814_v16  ;;  %v543_v47 = vpack.c.bf16 %v492_v45, %v491_v44  ;;  %v494_v49 = vld [vmem:[%s2945_s22 + $0xd8] sm:$0xff]  ;;  %v495_v50 = vld [vmem:[%s2945_s22 + $0xe0] sm:$0xff]  ;;  %v496_v51 = vld [vmem:[%s2945_s22 + $0xe8] sm:$0xff] }
  0x18   : > { %2609 = vmatprep.subr.mxu0 %v817_v4  ;;  %2756 = vmatpush3.msra.mxu1 %v814_v16  ;;  %v544_v52 = vpack.c.bf16 %v494_v49, %v493_v48  ;;  %v545_v53 = vpack.c.bf16 %v496_v51, %v495_v50  ;;  %v497_v54 = vld [vmem:[%s2945_s22 + $0xf0] sm:$0xff]  ;;  %v498_v55 = vld [vmem:[%s2945_s22 + $0xf8] sm:$0xff]  ;;  %v812_v57 = vld [vmem:[%s3745_s4] sm:$0xff]  ;;  %s3508_s22 = scalar_lea.vmem %s3753_s12, %s2936_s16 }
  0x19   : > { %2610 = vmatpush3.msra.mxu0 %v817_v4  ;;  %2749 = vmatprep.subr.mxu1 %v813_v21  ;;  %v546_v56 = vpack.c.bf16 %v498_v55, %v497_v54  ;;  %v3010_v58 = vld [vmem:[%s3744_s3] ss:$0 sm:$0xff] }
  0x1a   : > { %2611 = vmatprep.subr.mxu0 %v816_v5  ;;  %2757 = vmatpush3.msra.mxu1 %v813_v21 }
  0x1b   : > { %2612 = vmatpush3.msra.mxu0 %v816_v5  ;;  %2750 = vmatprep.subr.mxu1 %v812_v57 }
  0x1c   : > { %2578 = vmatmul.mubr.msk.bf16.gmra.mxu0 %vm570_vm0, %v534_v22  ;;  %2613 = vmatprep.subr.mxu0 %v815_v6 }
  0x1d   : > { %2581 = vmatprep.mubr.msk.bf16.mxu0 %vm570_vm0, %v535_v23  ;;  %2614 = vmatpush3.msra.mxu0 %v815_v6 }
  0x1e   : > { %2615 = vmatprep.subr.mxu0 %v814_v16  ;;  %2758 = vmatpush3.msra.mxu1 %v812_v57 }
  0x1f   : > { %2616 = vmatpush3.msra.mxu0 %v814_v16 }
  0x20   : > { %2617 = vmatprep.subr.mxu0 %v813_v21 }
  0x21   : > { %2618 = vmatpush3.msra.mxu0 %v813_v21 }
  0x22   : > { %2619 = vmatprep.subr.mxu0 %v812_v57 }
  0x23   : > { %2620 = vmatpush3.msra.mxu0 %v812_v57 }
  0x24   : > { %2582 = vmatmul.mubr.msk.bf16.gmra.mxu0 %vm570_vm0, %v536_v28 }
  0x25   : > { %2585 = vmatprep.mubr.msk.bf16.mxu0 %vm570_vm0, %v537_v29 }
  0x2c   : > { %2586 = vmatmul.mubr.msk.bf16.gmra.mxu0 %vm570_vm0, %v538_v34 }
  0x2d   : > { %2589 = vmatprep.mubr.msk.bf16.mxu0 %vm570_vm0, %v539_v35 }
  0x34   : > { %2590 = vmatmul.mubr.msk.bf16.gmra.mxu0 %vm570_vm0, %v540_v40 }
  0x35   : > { %2593 = vmatprep.mubr.msk.bf16.mxu0 %vm570_vm0, %v541_v41 }
  0x3c   : > { %2594 = vmatmul.mubr.msk.bf16.gmra.mxu0 %vm570_vm0, %v542_v46 }
  0x3d   : > { %2597 = vmatprep.mubr.msk.bf16.mxu0 %vm570_vm0, %v543_v47 }
  0x44   : > { %2598 = vmatmul.mubr.msk.bf16.gmra.mxu0 %vm570_vm0, %v544_v52 }
  0x45   : > { %2601 = vmatprep.mubr.msk.bf16.mxu0 %vm570_vm0, %v545_v53 }
  0x4c   : > { %2602 = vmatmul.mubr.msk.bf16.gmra.mxu0 %vm570_vm0, %v546_v56 }
  0xd4   : > { %v2575_v59 = vpop.f32.mrf.mxu0 }
  0xd5   : > { %v662_v60 = vadd.f32 %v2575_v59, %v3010_v58 }
  0xd6   : > { %v653_v61 = vpop.f32.mrf.mxu0 }
  0xd7   : > { %v782_v62 = vmax.f32 %v662_v60, 0.0  ;;  %v654_v63 = vadd.f32 %v3010_v58, %v653_v61 }
  0xd8   : > { %v2576_v0 = vpop.f32.mrf.mxu0 }
  0xd9   : > { %v780_v1 = vmax.f32 %v654_v63, 0.0  ;;  %v665_v2 = vadd.f32 %v2576_v0, %v3010_v58  ;;  %2624 = vmatprep.mubr.msk.f32.mxu1 %vm827_vm1, %v782_v62 }
  0xda   : > { %v656_v3 = vpop.f32.mrf.mxu0 }
  0xdb   : > { %v783_v4 = vmax.f32 %v665_v2, 0.0  ;;  %v657_v5 = vadd.f32 %v3010_v58, %v656_v3  ;;  %2621 = vmatprep.mubr.msk.f32.mxu0 %vm827_vm1, %v780_v1 }
  0xdc   : > { %v2579_v6 = vpop.f32.mrf.mxu0 }
  0xdd   : > { %v781_v7 = vmax.f32 %v657_v5, 0.0  ;;  %2625 = vmatmul.mubr.msk.f32.vlgmr.msra.gmra.mxu1 %vm827_vm1, %v783_v4  ;;  %v678_v12 = vadd.f32 %v2579_v6, %v3010_v58 }
  0xde   : > { %v669_v8 = vpop.f32.mrf.mxu0 }
  0xdf   : > { %v670_v9 = vadd.f32 %v3010_v58, %v669_v8  ;;  %2622 = vmatmul.mubr.msk.f32.vlgmr.msra.gmra.mxu0 %vm827_vm1, %v781_v7  ;;  %v786_v18 = vmax.f32 %v678_v12, 0.0 }
  0xe0   : > { %v2580_v10 = vpop.f32.mrf.mxu0 }
  0xe1   : > { %v784_v11 = vmax.f32 %v670_v9, 0.0  ;;  %v681_v16 = vadd.f32 %v2580_v10, %v3010_v58 }
  0xe2   : > { %v672_v13 = vpop.f32.mrf.mxu0 }
  0xe3   : > { %v673_v14 = vadd.f32 %v3010_v58, %v672_v13  ;;  %2627 = vmatprep.mubr.msk.f32.mxu1 %vm827_vm1, %v784_v11  ;;  %v787_v22 = vmax.f32 %v681_v16, 0.0 }
  0xe4   : > { %v2583_v15 = vpop.f32.mrf.mxu0 }
  0xe5   : > { %v785_v17 = vmax.f32 %v673_v14, 0.0  ;;  %v694_v24 = vadd.f32 %v2583_v15, %v3010_v58 }
  0xe6   : > { %v685_v19 = vpop.f32.mrf.mxu0 }
  0xe7   : > { %v686_v20 = vadd.f32 %v3010_v58, %v685_v19  ;;  %2628 = vmatmul.mubr.msk.f32.gmra.mxu1 %vm827_vm1, %v785_v17  ;;  %v790_v30 = vmax.f32 %v694_v24, 0.0 }
  0xe8   : > { %v2584_v21 = vpop.f32.mrf.mxu0  ;;  %2630 = vmatprep.mubr.msk.f32.mxu1 %vm827_vm1, %v786_v18 }
  0xe9   : > { %v788_v23 = vmax.f32 %v686_v20, 0.0  ;;  %v697_v28 = vadd.f32 %v2584_v21, %v3010_v58 }
  0xea   : > { %v688_v25 = vpop.f32.mrf.mxu0 }
  0xeb   : > { %v689_v26 = vadd.f32 %v3010_v58, %v688_v25  ;;  %2631 = vmatmul.mubr.msk.f32.gmra.mxu1 %vm827_vm1, %v787_v22  ;;  %v791_v34 = vmax.f32 %v697_v28, 0.0  ;;  %v3079_v28 = vld [vmem:[%s3746_s5] ss:$0 sm:$0xff] }
  0xec   : > { %v2587_v27 = vpop.f32.mrf.mxu0  ;;  %2633 = vmatprep.mubr.msk.f32.mxu1 %vm827_vm1, %v788_v23 }
  0xed   : > { %v789_v29 = vmax.f32 %v689_v26, 0.0  ;;  %v710_v36 = vadd.f32 %v2587_v27, %v3010_v58 }
  0xee   : > { %v701_v31 = vpop.f32.mrf.mxu0 }
  0xef   : > { %v702_v32 = vadd.f32 %v3010_v58, %v701_v31  ;;  %2634 = vmatmul.mubr.msk.f32.gmra.mxu1 %vm827_vm1, %v789_v29  ;;  %v794_v42 = vmax.f32 %v710_v36, 0.0 }
  0xf0   : > { %v2588_v33 = vpop.f32.mrf.mxu0  ;;  %2636 = vmatprep.mubr.msk.f32.mxu1 %vm827_vm1, %v790_v30 }
  0xf1   : > { %v792_v35 = vmax.f32 %v702_v32, 0.0  ;;  %v713_v40 = vadd.f32 %v2588_v33, %v3010_v58 }
  0xf2   : > { %v704_v37 = vpop.f32.mrf.mxu0 }
  0xf3   : > { %v705_v38 = vadd.f32 %v3010_v58, %v704_v37  ;;  %2637 = vmatmul.mubr.msk.f32.gmra.mxu1 %vm827_vm1, %v791_v34  ;;  %v795_v46 = vmax.f32 %v713_v40, 0.0 }
  0xf4   : > { %v2591_v39 = vpop.f32.mrf.mxu0  ;;  %2639 = vmatprep.mubr.msk.f32.mxu1 %vm827_vm1, %v792_v35 }
  0xf5   : > { %v793_v41 = vmax.f32 %v705_v38, 0.0  ;;  %v726_v48 = vadd.f32 %v2591_v39, %v3010_v58 }
  0xf6   : > { %v717_v43 = vpop.f32.mrf.mxu0 }
  0xf7   : > { %v718_v44 = vadd.f32 %v3010_v58, %v717_v43  ;;  %2640 = vmatmul.mubr.msk.f32.gmra.mxu1 %vm827_vm1, %v793_v41  ;;  %v798_v54 = vmax.f32 %v726_v48, 0.0 }
  0xf8   : > { %v2592_v45 = vpop.f32.mrf.mxu0  ;;  %2642 = vmatprep.mubr.msk.f32.mxu1 %vm827_vm1, %v794_v42 }
  0xf9   : > { %v796_v47 = vmax.f32 %v718_v44, 0.0  ;;  %v729_v52 = vadd.f32 %v2592_v45, %v3010_v58 }
  0xfa   : > { %v720_v49 = vpop.f32.mrf.mxu0 }
  0xfb   : > { %v721_v50 = vadd.f32 %v3010_v58, %v720_v49  ;;  %2643 = vmatmul.mubr.msk.f32.gmra.mxu1 %vm827_vm1, %v795_v46  ;;  %v799_v59 = vmax.f32 %v729_v52, 0.0 }
  0xfc   : > { %v2595_v51 = vpop.f32.mrf.mxu0  ;;  %2645 = vmatprep.mubr.msk.f32.mxu1 %vm827_vm1, %v796_v47 }
  0xfd   : > { %v797_v53 = vmax.f32 %v721_v50, 0.0  ;;  %v742_v61 = vadd.f32 %v2595_v51, %v3010_v58 }
  0xfe   : > { %v733_v55 = vpop.f32.mrf.mxu0 }
  0xff   : > { %v734_v56 = vadd.f32 %v3010_v58, %v733_v55  ;;  %2646 = vmatmul.mubr.msk.f32.gmra.mxu1 %vm827_vm1, %v797_v53  ;;  %v802_v3 = vmax.f32 %v742_v61, 0.0 }
 0x100   : > { %v2596_v57 = vpop.f32.mrf.mxu0  ;;  %2648 = vmatprep.mubr.msk.f32.mxu1 %vm827_vm1, %v798_v54 }
 0x101   : > { %v800_v60 = vmax.f32 %v734_v56, 0.0  ;;  %v745_v1 = vadd.f32 %v2596_v57, %v3010_v58 }
 0x102   : > { %v736_v62 = vpop.f32.mrf.mxu0 }
 0x103   : > { %v737_v63 = vadd.f32 %v3010_v58, %v736_v62  ;;  %2649 = vmatmul.mubr.msk.f32.gmra.mxu1 %vm827_vm1, %v799_v59  ;;  %v803_v7 = vmax.f32 %v745_v1, 0.0  ;;  %v2770_v59 = vld [vmem:[%s3747_s6] sm:$0xff]  }
 0x104   : > { %v2599_v0 = vpop.f32.mrf.mxu0  ;;  %2651 = vmatprep.mubr.msk.f32.mxu1 %vm827_vm1, %v800_v60  ;;  %2669 = vmatprep.subr.bf16.mxu0 %v2770_v59 }
 0x105   : > { %v801_v2 = vmax.f32 %v737_v63, 0.0  ;;  %v758_v9 = vadd.f32 %v2599_v0, %v3010_v58  ;;  %2670 = vmatpush3.bf16.msra.mxu0 %v2770_v59 }
 0x106   : > { %v749_v4 = vpop.f32.mrf.mxu0 }
 0x107   : > { %v750_v5 = vadd.f32 %v3010_v58, %v749_v4  ;;  %2652 = vmatmul.mubr.msk.f32.gmra.mxu1 %vm827_vm1, %v801_v2  ;;  %v806_v15 = vmax.f32 %v758_v9, 0.0 }
 0x108   : > { %v2600_v6 = vpop.f32.mrf.mxu0  ;;  %2654 = vmatprep.mubr.msk.f32.mxu1 %vm827_vm1, %v802_v3 }
 0x109   : > { %v804_v8 = vmax.f32 %v750_v5, 0.0  ;;  %v761_v13 = vadd.f32 %v2600_v6, %v3010_v58 }
 0x10a   : > { %v752_v10 = vpop.f32.mrf.mxu0 }
 0x10b   : > { %v753_v11 = vadd.f32 %v3010_v58, %v752_v10  ;;  %2655 = vmatmul.mubr.msk.f32.gmra.mxu1 %vm827_vm1, %v803_v7  ;;  %v807_v19 = vmax.f32 %v761_v13, 0.0 }
 0x10c   : > { %v2603_v12 = vpop.f32.mrf.mxu0  ;;  %2657 = vmatprep.mubr.msk.f32.mxu1 %vm827_vm1, %v804_v8 }
 0x10d   : > { %v805_v14 = vmax.f32 %v753_v11, 0.0  ;;  %v774_v21 = vadd.f32 %v2603_v12, %v3010_v58 }
 0x10e   : > { %v765_v16 = vpop.f32.mrf.mxu0 }
 0x10f   : > { %v766_v17 = vadd.f32 %v3010_v58, %v765_v16  ;;  %2658 = vmatmul.mubr.msk.f32.gmra.mxu1 %vm827_vm1, %v805_v14  ;;  %v810_v26 = vmax.f32 %v774_v21, 0.0 }
 0x110   : > { %v2604_v18 = vpop.f32.mrf.mxu0  ;;  %2660 = vmatprep.mubr.msk.f32.mxu1 %vm827_vm1, %v806_v15 }
 0x111   : > { %v808_v20 = vmax.f32 %v766_v17, 0.0  ;;  %v777_v24 = vadd.f32 %v2604_v18, %v3010_v58 }
 0x112   : > { %v768_v22 = vpop.f32.mrf.mxu0 }
 0x113   : > { %v769_v23 = vadd.f32 %v3010_v58, %v768_v22  ;;  %2661 = vmatmul.mubr.msk.f32.gmra.mxu1 %vm827_vm1, %v807_v19  ;;  %v811_v27 = vmax.f32 %v777_v24, 0.0 }
 0x114   : > { %2663 = vmatprep.mubr.msk.f32.mxu1 %vm827_vm1, %v808_v20 }
 0x115   : > { %v809_v25 = vmax.f32 %v769_v23, 0.0 }
 0x117   : > { %2664 = vmatmul.mubr.msk.f32.gmra.mxu1 %vm827_vm1, %v809_v25 }
 0x118   : > { %2666 = vmatprep.mubr.msk.f32.mxu1 %vm827_vm1, %v810_v26 }
 0x11b   : > { %2667 = vmatmul.mubr.msk.f32.gmra.mxu1 %vm827_vm1, %v811_v27 }
 0x19d   : > { %v2626_v58 = vpop.f32.mrf.mxu1 }
 0x19e   : > { %v3088_v29 = vadd.f32 %v2626_v58, %v3079_v28 }
 0x19f   : > { %v2623_v30 = vpop.f32.mrf.mxu0  ;;  %v1000_v31 = vpop.f32.mrf.mxu1 }
 0x1a0   : > { %2041 = vst.msk [vmem:[%s3085_s20 + $0x18] sm:$0xff] %vm1468_vm2, %v3088_v29  ;;  %v3094_v32 = vadd.f32 %v2623_v30, %v3079_v28  ;;  %v3097_v33 = vadd.f32 %v3079_v28, %v1000_v31  ;;  %v1152_v37 = vmul.f32 0.5, %v3088_v29 }
 0x1a1   : > { %v990_v34 = vpop.f32.mrf.mxu0 }
 0x1a2   : > { %2039 = vst.msk [vmem:[%s3085_s20 + $0x8] sm:$0xff] %vm1468_vm2, %v3094_v32  ;;  %v1151_v35 = vmul.f32 0.5, %v3097_v33  ;;  %2040 = vst.msk [vmem:[%s3085_s20 + $0x10] sm:$0xff] %vm1468_vm2, %v3097_v33  ;;  %v3107_v36 = vadd.f32 %v3079_v28, %v990_v34  ;;  %v1150_v38 = vmul.f32 0.5, %v3094_v32  ;;  %v1187_v42 = vmul.f32 1.442695, %v1152_v37 }
 0x1a4   : > { %v1185_v39 = vmul.f32 1.442695, %v1151_v35  ;;  %v1149_v40 = vmul.f32 0.5, %v3107_v36  ;;  %2038 = vst.msk [vmem:[%s3085_s20] sm:$0xff] %vm1468_vm2, %v3107_v36  ;;  %v1183_v44 = vmul.f32 1.442695, %v1150_v38 }
 0x1a6   : > { %v1181_v41 = vmul.f32 1.442695, %v1149_v40  ;;  %2775 = vpow2.f32 %v1185_v39 }
 0x1a7   : > { %v2629_v43 = vpop.f32.mrf.mxu1 }
 0x1a8   : > { %2777 = vpow2.f32 %v1181_v41  ;;  %v3116_v45 = vadd.f32 %v2629_v43, %v3079_v28 }
 0x1a9   : > { %v1010_v46 = vpop.f32.mrf.mxu1  ;;  %2779 = vpow2.f32 %v1187_v42 }
 0x1aa   : > { %v1154_v47 = vmul.f32 0.5, %v3116_v45  ;;  %2043 = vst.msk [vmem:[%s3085_s20 + $0x28] sm:$0xff] %vm1468_vm2, %v3116_v45  ;;  %v3123_v48 = vadd.f32 %v3079_v28, %v1010_v46  ;;  %2781 = vpow2.f32 %v1183_v44 }
 0x1ab   : > { %v2632_v49 = vpop.f32.mrf.mxu1 }
 0x1ac   : > { %v1191_v50 = vmul.f32 1.442695, %v1154_v47  ;;  %v1153_v51 = vmul.f32 0.5, %v3123_v48  ;;  %2042 = vst.msk [vmem:[%s3085_s20 + $0x20] sm:$0xff] %vm1468_vm2, %v3123_v48  ;;  %v3130_v52 = vadd.f32 %v2632_v49, %v3079_v28 }
 0x1ad   : > { %v1020_v53 = vpop.f32.mrf.mxu1 }
 0x1ae   : > { %2783 = vpow2.f32 %v1191_v50  ;;  %v1189_v54 = vmul.f32 1.442695, %v1153_v51  ;;  %v1156_v55 = vmul.f32 0.5, %v3130_v52  ;;  %2045 = vst.msk [vmem:[%s3085_s20 + $0x38] sm:$0xff] %vm1468_vm2, %v3130_v52  ;;  %v3137_v56 = vadd.f32 %v3079_v28, %v1020_v53 }
 0x1af   : > { %v2635_v57 = vpop.f32.mrf.mxu1 }
 0x1b0   : > { %2785 = vpow2.f32 %v1189_v54  ;;  %v1195_v60 = vmul.f32 1.442695, %v1156_v55  ;;  %v1155_v61 = vmul.f32 0.5, %v3137_v56  ;;  %2044 = vst.msk [vmem:[%s3085_s20 + $0x30] sm:$0xff] %vm1468_vm2, %v3137_v56  ;;  %v3147_v62 = vadd.f32 %v2635_v57, %v3079_v28 }
 0x1b1   : > { %v1030_v63 = vpop.f32.mrf.mxu1 }
 0x1b2   : > { %2787 = vpow2.f32 %v1195_v60  ;;  %v1193_v0 = vmul.f32 1.442695, %v1155_v61  ;;  %v1158_v1 = vmul.f32 0.5, %v3147_v62  ;;  %2047 = vst.msk [vmem:[%s3085_s20 + $0x48] sm:$0xff] %vm1468_vm2, %v3147_v62  ;;  %v3154_v2 = vadd.f32 %v3079_v28, %v1030_v63 }
 0x1b3   : > { %v2638_v3 = vpop.f32.mrf.mxu1  ;;  %v2776_v4 = vpop.eup %2775 }
 0x1b4   : > { %2789 = vpow2.f32 %v1193_v0  ;;  %v1199_v5 = vmul.f32 1.442695, %v1158_v1  ;;  %v1157_v6 = vmul.f32 0.5, %v3154_v2  ;;  %2046 = vst.msk [vmem:[%s3085_s20 + $0x40] sm:$0xff] %vm1468_vm2, %v3154_v2  ;;  %v3161_v7 = vadd.f32 %v2638_v3, %v3079_v28  ;;  %1281 = vrot.lane.b32.xlu1 %v2776_v4, %s2847_s24 }
 0x1b5   : > { %v2778_v8 = vpop.eup %2777  ;;  %v1040_v9 = vpop.f32.mrf.mxu1 }
 0x1b6   : > { %2791 = vpow2.f32 %v1199_v5  ;;  %v1197_v10 = vmul.f32 1.442695, %v1157_v6  ;;  %v1160_v11 = vmul.f32 0.5, %v3161_v7  ;;  %2049 = vst.msk [vmem:[%s3085_s20 + $0x58] sm:$0xff] %vm1468_vm2, %v3161_v7  ;;  %v3169_v12 = vadd.f32 %v3079_v28, %v1040_v9  ;;  %1277 = vrot.lane.b32.xlu0 %v2778_v8, %s2847_s24  ;;  %v2780_v14 = vpop.eup %2779 }
 0x1b7   : > { %v2641_v13 = vpop.f32.mrf.mxu1  ;;  %v2782_v18 = vpop.eup %2781 }
 0x1b8   : > { %2793 = vpow2.f32 %v1197_v10  ;;  %v1203_v15 = vmul.f32 1.442695, %v1160_v11  ;;  %v1159_v16 = vmul.f32 0.5, %v3169_v12  ;;  %2048 = vst.msk [vmem:[%s3085_s20 + $0x50] sm:$0xff] %vm1468_vm2, %v3169_v12  ;;  %v3177_v17 = vadd.f32 %v2641_v13, %v3079_v28  ;;  %1283 = vrot.lane.b32.xlu1 %v2780_v14, %s2847_s24 }
 0x1b9   : > { %v1050_v19 = vpop.f32.mrf.mxu1 }
 0x1ba   : > { %2795 = vpow2.f32 %v1203_v15  ;;  %v1201_v20 = vmul.f32 1.442695, %v1159_v16  ;;  %v1162_v21 = vmul.f32 0.5, %v3177_v17  ;;  %2051 = vst.msk [vmem:[%s3085_s20 + $0x68] sm:$0xff] %vm1468_vm2, %v3177_v17  ;;  %v3185_v22 = vadd.f32 %v3079_v28, %v1050_v19  ;;  %1279 = vrot.lane.b32.xlu0 %v2782_v18, %s2847_s24 }
 0x1bb   : > { %v2784_v23 = vpop.eup %2783  ;;  %v2644_v24 = vpop.f32.mrf.mxu1 }
 0x1bc   : > { %2797 = vpow2.f32 %v1201_v20  ;;  %v1207_v25 = vmul.f32 1.442695, %v1162_v21  ;;  %v1161_v26 = vmul.f32 0.5, %v3185_v22  ;;  %2050 = vst.msk [vmem:[%s3085_s20 + $0x60] sm:$0xff] %vm1468_vm2, %v3185_v22  ;;  %v3193_v27 = vadd.f32 %v2644_v24, %v3079_v28  ;;  %1287 = vrot.lane.b32.xlu1 %v2784_v23, %s2847_s24 }
 0x1bd   : > { %v2786_v58 = vpop.eup %2785  ;;  %v1060_v30 = vpop.f32.mrf.mxu1 }
 0x1be   : > { %2799 = vpow2.f32 %v1207_v25  ;;  %v1205_v31 = vmul.f32 1.442695, %v1161_v26  ;;  %v1164_v34 = vmul.f32 0.5, %v3193_v27  ;;  %2053 = vst.msk [vmem:[%s3085_s20 + $0x78] sm:$0xff] %vm1468_vm2, %v3193_v27  ;;  %v3201_v35 = vadd.f32 %v3079_v28, %v1060_v30  ;;  %1285 = vrot.lane.b32.xlu0 %v2786_v58, %s2847_s24 }
 0x1bf   : > { %v2788_v37 = vpop.eup %2787  ;;  %v2647_v38 = vpop.f32.mrf.mxu1 }
 0x1c0   : > { %2801 = vpow2.f32 %v1205_v31  ;;  %v1211_v39 = vmul.f32 1.442695, %v1164_v34  ;;  %v1163_v40 = vmul.f32 0.5, %v3201_v35  ;;  %2052 = vst.msk [vmem:[%s3085_s20 + $0x70] sm:$0xff] %vm1468_vm2, %v3201_v35  ;;  %v3209_v41 = vadd.f32 %v2647_v38, %v3079_v28  ;;  %1291 = vrot.lane.b32.xlu1 %v2788_v37, %s2847_s24 }
 0x1c1   : > { %v2790_v42 = vpop.eup %2789  ;;  %v1070_v43 = vpop.f32.mrf.mxu1 }
 0x1c2   : > { %2803 = vpow2.f32 %v1211_v39  ;;  %v1209_v44 = vmul.f32 1.442695, %v1163_v40  ;;  %v1166_v46 = vmul.f32 0.5, %v3209_v41  ;;  %2055 = vst.msk [vmem:[%s3085_s20 + $0x88] sm:$0xff] %vm1468_vm2, %v3209_v41  ;;  %v3217_v47 = vadd.f32 %v3079_v28, %v1070_v43  ;;  %1289 = vrot.lane.b32.xlu0 %v2790_v42, %s2847_s24 }
 0x1c3   : > { %v2792_v49 = vpop.eup %2791  ;;  %v2650_v50 = vpop.f32.mrf.mxu1 }
 0x1c4   : > { %2805 = vpow2.f32 %v1209_v44  ;;  %v1215_v51 = vmul.f32 1.442695, %v1166_v46  ;;  %v1165_v53 = vmul.f32 0.5, %v3217_v47  ;;  %2054 = vst.msk [vmem:[%s3085_s20 + $0x80] sm:$0xff] %vm1468_vm2, %v3217_v47  ;;  %v3225_v54 = vadd.f32 %v2650_v50, %v3079_v28  ;;  %1295 = vrot.lane.b32.xlu1 %v2792_v49, %s2847_s24 }
 0x1c5   : > { %v2794_v55 = vpop.eup %2793  ;;  %v1080_v57 = vpop.f32.mrf.mxu1 }
 0x1c6   : > { %2807 = vpow2.f32 %v1215_v51  ;;  %v1213_v59 = vmul.f32 1.442695, %v1165_v53  ;;  %v1168_v60 = vmul.f32 0.5, %v3225_v54  ;;  %2057 = vst.msk [vmem:[%s3085_s20 + $0x98] sm:$0xff] %vm1468_vm2, %v3225_v54  ;;  %v3233_v61 = vadd.f32 %v3079_v28, %v1080_v57  ;;  %1293 = vrot.lane.b32.xlu0 %v2794_v55, %s2847_s24 }
 0x1c7   : > { %v2796_v63 = vpop.eup %2795  ;;  %v2653_v0 = vpop.f32.mrf.mxu1 }
 0x1c8   : > { %2809 = vpow2.f32 %v1213_v59  ;;  %v1219_v1 = vmul.f32 1.442695, %v1168_v60  ;;  %v1167_v3 = vmul.f32 0.5, %v3233_v61  ;;  %2056 = vst.msk [vmem:[%s3085_s20 + $0x90] sm:$0xff] %vm1468_vm2, %v3233_v61  ;;  %v3241_v4 = vadd.f32 %v2653_v0, %v3079_v28  ;;  %1299 = vrot.lane.b32.xlu1 %v2796_v63, %s2847_s24 }
 0x1c9   : > { %v2798_v5 = vpop.eup %2797  ;;  %v1090_v6 = vpop.f32.mrf.mxu1 }
 0x1ca   : > { %2811 = vpow2.f32 %v1219_v1  ;;  %v1217_v8 = vmul.f32 1.442695, %v1167_v3  ;;  %v1170_v9 = vmul.f32 0.5, %v3241_v4  ;;  %2059 = vst.msk [vmem:[%s3085_s20 + $0xa8] sm:$0xff] %vm1468_vm2, %v3241_v4  ;;  %v3249_v10 = vadd.f32 %v3079_v28, %v1090_v6  ;;  %1297 = vrot.lane.b32.xlu0 %v2798_v5, %s2847_s24 }
 0x1cb   : > { %v2800_v11 = vpop.eup %2799  ;;  %v2656_v13 = vpop.f32.mrf.mxu1 }
 0x1cc   : > { %2813 = vpow2.f32 %v1217_v8  ;;  %v1223_v14 = vmul.f32 1.442695, %v1170_v9  ;;  %v1169_v15 = vmul.f32 0.5, %v3249_v10  ;;  %2058 = vst.msk [vmem:[%s3085_s20 + $0xa0] sm:$0xff] %vm1468_vm2, %v3249_v10  ;;  %v3257_v16 = vadd.f32 %v2656_v13, %v3079_v28  ;;  %1303 = vrot.lane.b32.xlu1 %v2800_v11, %s2847_s24 }
 0x1cd   : > { %v2802_v18 = vpop.eup %2801  ;;  %v1100_v19 = vpop.f32.mrf.mxu1 }
 0x1ce   : > { %2815 = vpow2.f32 %v1223_v14  ;;  %v1221_v20 = vmul.f32 1.442695, %v1169_v15  ;;  %v1172_v21 = vmul.f32 0.5, %v3257_v16  ;;  %2061 = vst.msk [vmem:[%s3085_s20 + $0xb8] sm:$0xff] %vm1468_vm2, %v3257_v16  ;;  %v3265_v23 = vadd.f32 %v3079_v28, %v1100_v19  ;;  %1301 = vrot.lane.b32.xlu0 %v2802_v18, %s2847_s24 }
 0x1cf   : > { %v2804_v24 = vpop.eup %2803  ;;  %v2659_v25 = vpop.f32.mrf.mxu1 }
 0x1d0   : > { %2817 = vpow2.f32 %v1221_v20  ;;  %v1227_v26 = vmul.f32 1.442695, %v1172_v21  ;;  %v1171_v58 = vmul.f32 0.5, %v3265_v23  ;;  %2060 = vst.msk [vmem:[%s3085_s20 + $0xb0] sm:$0xff] %vm1468_vm2, %v3265_v23  ;;  %v3273_v30 = vadd.f32 %v2659_v25, %v3079_v28  ;;  %1307 = vrot.lane.b32.xlu1 %v2804_v24, %s2847_s24 }
 0x1d1   : > { %v2806_v31 = vpop.eup %2805  ;;  %v1110_v34 = vpop.f32.mrf.mxu1 }
 0x1d2   : > { %2819 = vpow2.f32 %v1227_v26  ;;  %v1225_v37 = vmul.f32 1.442695, %v1171_v58  ;;  %v1174_v38 = vmul.f32 0.5, %v3273_v30  ;;  %2063 = vst.msk [vmem:[%s3085_s20 + $0xc8] sm:$0xff] %vm1468_vm2, %v3273_v30  ;;  %v3281_v39 = vadd.f32 %v3079_v28, %v1110_v34  ;;  %1305 = vrot.lane.b32.xlu0 %v2806_v31, %s2847_s24 }
 0x1d3   : > { %v2808_v40 = vpop.eup %2807  ;;  %v2662_v42 = vpop.f32.mrf.mxu1 }
 0x1d4   : > { %2821 = vpow2.f32 %v1225_v37  ;;  %v1231_v43 = vmul.f32 1.442695, %v1174_v38  ;;  %v1173_v44 = vmul.f32 0.5, %v3281_v39  ;;  %2062 = vst.msk [vmem:[%s3085_s20 + $0xc0] sm:$0xff] %vm1468_vm2, %v3281_v39  ;;  %v3289_v46 = vadd.f32 %v2662_v42, %v3079_v28  ;;  %1311 = vrot.lane.b32.xlu1 %v2808_v40, %s2847_s24 }
 0x1d5   : > { %v2810_v49 = vpop.eup %2809  ;;  %v1120_v50 = vpop.f32.mrf.mxu1 }
 0x1d6   : > { %2823 = vpow2.f32 %v1231_v43  ;;  %v1229_v51 = vmul.f32 1.442695, %v1173_v44  ;;  %v1176_v53 = vmul.f32 0.5, %v3289_v46  ;;  %2065 = vst.msk [vmem:[%s3085_s20 + $0xd8] sm:$0xff] %vm1468_vm2, %v3289_v46  ;;  %v3297_v55 = vadd.f32 %v3079_v28, %v1120_v50  ;;  %1309 = vrot.lane.b32.xlu0 %v2810_v49, %s2847_s24  ;;  %v2771_v50 = vld [vmem:[%s3749_s8 + $0x18] sm:$0xff]  }
 0x1d7   : > { %v2812_v57 = vpop.eup %2811  ;;  %v2665_v59 = vpop.f32.mrf.mxu1  ;;  %2703 = vmatprep.subr.bf16.mxu1 %v2771_v50 }
 0x1d8   : > { %2825 = vpow2.f32 %v1229_v51  ;;  %v1235_v60 = vmul.f32 1.442695, %v1176_v53  ;;  %v1175_v63 = vmul.f32 0.5, %v3297_v55  ;;  %2064 = vst.msk [vmem:[%s3085_s20 + $0xd0] sm:$0xff] %vm1468_vm2, %v3297_v55  ;;  %v3305_v0 = vadd.f32 %v2665_v59, %v3079_v28  ;;  %1315 = vrot.lane.b32.xlu1 %v2812_v57, %s2847_s24  ;;  %v2772_v51 = vld [vmem:[%s3749_s8 + $0x10] sm:$0xff]   ;;  %v499_v57 = vld [vmem:[%s3406_s13] sm:$0xff]  ;;  %2704 = vmatpush3.bf16.msra.mxu1 %v2771_v50 }
 0x1d9   : > { %v2814_v1 = vpop.eup %2813  ;;  %v1130_v3 = vpop.f32.mrf.mxu1  ;;  %2705 = vmatprep.subr.bf16.mxu1 %v2772_v51 }
 0x1da   : > { %2827 = vpow2.f32 %v1235_v60  ;;  %v1233_v5 = vmul.f32 1.442695, %v1175_v63  ;;  %v1178_v6 = vmul.f32 0.5, %v3305_v0  ;;  %2067 = vst.msk [vmem:[%s3085_s20 + $0xe8] sm:$0xff] %vm1468_vm2, %v3305_v0  ;;  %v3313_v8 = vadd.f32 %v3079_v28, %v1130_v3  ;;  %1313 = vrot.lane.b32.xlu0 %v2814_v1, %s2847_s24  ;;  %v501_v60 = vld [vmem:[%s3406_s13 + $0x10] sm:$0xff]  ;;  %v502_v63 = vld [vmem:[%s3406_s13 + $0x18] sm:$0xff] }
 0x1db   : > { %v2816_v9 = vpop.eup %2815  ;;  %v2668_v11 = vpop.f32.mrf.mxu1  ;;  %v2773_v1 = vld [vmem:[%s3749_s8 + $0x8] sm:$0xff]  }
 0x1dc   : > { %2829 = vpow2.f32 %v1233_v5  ;;  %v1239_v13 = vmul.f32 1.442695, %v1178_v6  ;;  %v1177_v14 = vmul.f32 0.5, %v3313_v8  ;;  %2066 = vst.msk [vmem:[%s3085_s20 + $0xe0] sm:$0xff] %vm1468_vm2, %v3313_v8  ;;  %v3321_v15 = vadd.f32 %v2668_v11, %v3079_v28  ;;  %1319 = vrot.lane.b32.xlu1 %v2816_v9, %s2847_s24  ;;  %v500_v3 = vld [vmem:[%s3406_s13 + $0x8] sm:$0xff]  ;;  %2706 = vmatpush3.bf16.msra.mxu1 %v2772_v51 }
 0x1dd   : > { %v2818_v18 = vpop.eup %2817  ;;  %v1140_v19 = vpop.f32.mrf.mxu1  ;;  %2707 = vmatprep.subr.bf16.mxu1 %v2773_v1  ;;  %v508_v51 = vld [vmem:[%s3406_s13 + $0x48] sm:$0xff] }
 0x1de   : > { %2831 = vpow2.f32 %v1239_v13  ;;  %v1237_v20 = vmul.f32 1.442695, %v1177_v14  ;;  %v1180_v21 = vmul.f32 0.5, %v3321_v15  ;;  %2069 = vst.msk [vmem:[%s3085_s20 + $0xf8] sm:$0xff] %vm1468_vm2, %v3321_v15  ;;  %v3329_v24 = vadd.f32 %v3079_v28, %v1140_v19  ;;  %1317 = vrot.lane.b32.xlu0 %v2818_v18, %s2847_s24  ;;  %v504_v18 = vld [vmem:[%s3406_s13 + $0x28] sm:$0xff]  ;;  %v2774_v19 = vld [vmem:[%s3749_s8] sm:$0xff]  }
 0x1df   : > { %v2820_v25 = vpop.eup %2819 }
 0x1e0   : > { %2833 = vpow2.f32 %v1237_v20  ;;  %v1243_v26 = vmul.f32 1.442695, %v1180_v21  ;;  %v1179_v58 = vmul.f32 0.5, %v3329_v24  ;;  %2068 = vst.msk [vmem:[%s3085_s20 + $0xf0] sm:$0xff] %vm1468_vm2, %v3329_v24  ;;  %1323 = vrot.lane.b32.xlu1 %v2820_v25, %s2847_s24  ;;  %v503_v21 = vld [vmem:[%s3406_s13 + $0x20] sm:$0xff]  ;;  %2708 = vmatpush3.bf16.msra.mxu1 %v2773_v1 }
 0x1e1   : > { %v2822_v31 = vpop.eup %2821  ;;  %2709 = vmatprep.subr.bf16.mxu1 %v2774_v19 }
 0x1e2   : > { %2835 = vpow2.f32 %v1243_v26  ;;  %v1241_v34 = vmul.f32 1.442695, %v1179_v58  ;;  %1321 = vrot.lane.b32.xlu0 %v2822_v31, %s2847_s24 }
 0x1e3   : > { %v2824_v37 = vpop.eup %2823 }
 0x1e4   : > { %2837 = vpow2.f32 %v1241_v34  ;;  %1327 = vrot.lane.b32.xlu1 %v2824_v37, %s2847_s24  ;;  %2710 = vmatpush3.bf16.msra.mxu1 %v2774_v19  ;;  %v511_v19 = vld [vmem:[%s3406_s13 + $0x60] sm:$0xff] }
 0x1e5   : > { %v2826_v28 = vpop.eup %2825 }
 0x1e6   : > { %1325 = vrot.lane.b32.xlu0 %v2826_v28, %s2847_s24 }
 0x1e7   : > { %v2828_v38 = vpop.eup %2827 }
 0x1e8   : > { %1331 = vrot.lane.b32.xlu1 %v2828_v38, %s2847_s24  ;;  %v506_v38 = vld [vmem:[%s3406_s13 + $0x38] sm:$0xff] }
 0x1e9   : > { %v2830_v40 = vpop.eup %2829 }
 0x1ea   : > { %1329 = vrot.lane.b32.xlu0 %v2830_v40, %s2847_s24 }
 0x1eb   : > { %v2832_v42 = vpop.eup %2831 }
 0x1ec   : > { %1335 = vrot.lane.b32.xlu1 %v2832_v42, %s2847_s24 }
 0x1ed   : > { %v2834_v43 = vpop.eup %2833 }
 0x1ee   : > { %1333 = vrot.lane.b32.xlu0 %v2834_v43, %s2847_s24 }
 0x1ef   : > { %v2836_v44 = vpop.eup %2835 }
 0x1f0   : > { %1339 = vrot.lane.b32.xlu1 %v2836_v44, %s2847_s24 }
 0x1f1   : > { %v2838_v49 = vpop.eup %2837 }
 0x1f2   : > { %1337 = vrot.lane.b32.xlu0 %v2838_v49, %s2847_s24 }
 0x1f4   : > { %2104 = vrot.lane.b32.xlu1 %v3094_v32, %s2847_s24 }
 0x1f6   : > { %2102 = vrot.lane.b32.xlu0 %v3107_v36, %s2847_s24 }
 0x1f8   : > { %2108 = vrot.lane.b32.xlu1 %v3088_v29, %s2847_s24 }
 0x1fa   : > { %2106 = vrot.lane.b32.xlu0 %v3097_v33, %s2847_s24 }
 0x1fc   : > { %2112 = vrot.lane.b32.xlu1 %v3116_v45, %s2847_s24 }
 0x1fe   : > { %2110 = vrot.lane.b32.xlu0 %v3123_v48, %s2847_s24 }
 0x200   : > { %2116 = vrot.lane.b32.xlu1 %v3130_v52, %s2847_s24 }
 0x202   : > { %2114 = vrot.lane.b32.xlu0 %v3137_v56, %s2847_s24 }
 0x204   : > { %2120 = vrot.lane.b32.xlu1 %v3147_v62, %s2847_s24 }
 0x206   : > { %2118 = vrot.lane.b32.xlu0 %v3154_v2, %s2847_s24 }
 0x208   : > { %2124 = vrot.lane.b32.xlu1 %v3161_v7, %s2847_s24 }
 0x20a   : > { %2122 = vrot.lane.b32.xlu0 %v3169_v12, %s2847_s24 }
 0x20c   : > { %2128 = vrot.lane.b32.xlu1 %v3177_v17, %s2847_s24 }
 0x20e   : > { %2126 = vrot.lane.b32.xlu0 %v3185_v22, %s2847_s24 }
 0x210   : > { %2132 = vrot.lane.b32.xlu1 %v3193_v27, %s2847_s24 }
 0x212   : > { %2130 = vrot.lane.b32.xlu0 %v3201_v35, %s2847_s24 }
 0x214   : > { %2136 = vrot.lane.b32.xlu1 %v3209_v41, %s2847_s24 }
 0x216   : > { %2134 = vrot.lane.b32.xlu0 %v3217_v47, %s2847_s24 }
 0x218   : > { %2140 = vrot.lane.b32.xlu1 %v3225_v54, %s2847_s24 }
 0x21a   : > { %2138 = vrot.lane.b32.xlu0 %v3233_v61, %s2847_s24 }
 0x21c   : > { %2144 = vrot.lane.b32.xlu1 %v3241_v4, %s2847_s24 }
 0x21e   : > { %2142 = vrot.lane.b32.xlu0 %v3249_v10, %s2847_s24 }
 0x220   : > { %2148 = vrot.lane.b32.xlu1 %v3257_v16, %s2847_s24 }
 0x222   : > { %2146 = vrot.lane.b32.xlu0 %v3265_v23, %s2847_s24 }
 0x224   : > { %2152 = vrot.lane.b32.xlu1 %v3273_v30, %s2847_s24 }
 0x226   : > { %2150 = vrot.lane.b32.xlu0 %v3281_v39, %s2847_s24  ;;  %v1282_v53 = vpop.permute.xlu1 %1281 }
 0x227   : > { %v1375_v9 = vmul.f32 %v1282_v53, %v501_v60  ;;  %v507_v53 = vld [vmem:[%s3406_s13 + $0x40] sm:$0xff] }
 0x228   : > { %v1278_v59 = vpop.permute.xlu0 %1277  ;;  %2156 = vrot.lane.b32.xlu1 %v3289_v46, %s2847_s24 }
 0x229   : > { %v1373_v5 = vmul.f32 %v1278_v59, %v499_v57  ;;  %v1407_v31 = vadd.f32 %v1375_v9, %v3097_v33 }
 0x22a   : > { %2154 = vrot.lane.b32.xlu0 %v3297_v55, %s2847_s24  ;;  %v1284_v6 = vpop.permute.xlu1 %1283 }
 0x22b   : > { %v1376_v11 = vmul.f32 %v1284_v6, %v502_v63  ;;  %v1405_v25 = vadd.f32 %v1373_v5, %v3107_v36  ;;  %v509_v5 = vld [vmem:[%s3406_s13 + $0x50] sm:$0xff] }
 0x22c   : > { %v1280_v13 = vpop.permute.xlu0 %1279  ;;  %2160 = vrot.lane.b32.xlu1 %v3305_v0, %s2847_s24 }
 0x22d   : > { %v1374_v14 = vmul.f32 %v1280_v13, %v500_v3  ;;  %v1408_v20 = vadd.f32 %v1376_v11, %v3088_v29  ;;  %v510_v3 = vld [vmem:[%s3406_s13 + $0x58] sm:$0xff] }
 0x22e   : > { %2158 = vrot.lane.b32.xlu0 %v3313_v8, %s2847_s24  ;;  %v1288_v58 = vpop.permute.xlu1 %1287 }
 0x22f   : > { %v1406_v26 = vadd.f32 %v1374_v14, %v3094_v32  ;;  %v1378_v34 = vmul.f32 %v1288_v58, %v504_v18  ;;  %v1438_v40 = vpack.c.bf16 %v1408_v20, %v1407_v31  ;;  %v505_v32 = vld [vmem:[%s3406_s13 + $0x30] sm:$0xff]  ;;  %v512_v18 = vld [vmem:[%s3406_s13 + $0x68] sm:$0xff]  ;;  %v514_v31 = vld [vmem:[%s3406_s13 + $0x78] sm:$0xff] }
 0x230   : > { %v1286_v37 = vpop.permute.xlu0 %1285  ;;  %2164 = vrot.lane.b32.xlu1 %v3321_v15, %s2847_s24 }
 0x231   : > { %v1437_v28 = vpack.c.bf16 %v1406_v26, %v1405_v25  ;;  %v1377_v29 = vmul.f32 %v1286_v37, %v503_v21  ;;  %v1410_v36 = vadd.f32 %v1378_v34, %v3116_v45  ;;  %v513_v34 = vld [vmem:[%s3406_s13 + $0x70] sm:$0xff] }
 0x232   : > { %2162 = vrot.lane.b32.xlu0 %v3329_v24, %s2847_s24  ;;  %v1292_v42 = vpop.permute.xlu1 %1291 }
 0x233   : > { %v1409_v33 = vadd.f32 %v1377_v29, %v3123_v48  ;;  %2671 = vmatprep.mubr.msk.bf16.mxu0 %vm1468_vm2, %v1437_v28  ;;  %v1380_v43 = vmul.f32 %v1292_v42, %v506_v38 }
 0x234   : > { %2672 = vmatmul.mubr.msk.bf16.vlgmr.msra.gmra.mxu0 %vm1468_vm2, %v1438_v40  ;;  %v1290_v44 = vpop.permute.xlu0 %1289 }
 0x235   : > { %v1439_v49 = vpack.c.bf16 %v1410_v36, %v1409_v33  ;;  %v1379_v50 = vmul.f32 %v1290_v44, %v505_v32  ;;  %v1412_v57 = vadd.f32 %v1380_v43, %v3130_v52  ;;  %v516_v32 = vld [vmem:[%s3406_s13 + $0x88] sm:$0xff]  ;;  %v515_v36 = vld [vmem:[%s3406_s13 + $0x80] sm:$0xff] }
 0x236   : > { %v1296_v59 = vpop.permute.xlu1 %1295 }
 0x237   : > { %v1411_v45 = vadd.f32 %v1379_v50, %v3137_v56  ;;  %2675 = vmatprep.mubr.msk.bf16.mxu0 %vm1468_vm2, %v1439_v49  ;;  %v1382_v48 = vmul.f32 %v1296_v59, %v508_v51  ;;  %v518_v50 = vld [vmem:[%s3406_s13 + $0x98] sm:$0xff]  ;;  %v517_v51 = vld [vmem:[%s3406_s13 + $0x90] sm:$0xff] }
 0x238   : > { %v1294_v60 = vpop.permute.xlu0 %1293 }
 0x239   : > { %v1440_v63 = vpack.c.bf16 %v1412_v57, %v1411_v45  ;;  %v1381_v1 = vmul.f32 %v1294_v60, %v507_v53  ;;  %v1414_v6 = vadd.f32 %v1382_v48, %v3147_v62  ;;  %v520_v60 = vld [vmem:[%s3406_s13 + $0xa8] sm:$0xff] }
 0x23a   : > { %v1300_v11 = vpop.permute.xlu1 %1299 }
 0x23b   : > { %v1413_v9 = vadd.f32 %v1381_v1, %v3154_v2  ;;  %v1384_v52 = vmul.f32 %v1300_v11, %v510_v3  ;;  %v522_v11 = vld [vmem:[%s3406_s13 + $0xb8] sm:$0xff] }
 0x23c   : > { %2676 = vmatmul.mubr.msk.bf16.gmra.mxu0 %vm1468_vm2, %v1440_v63  ;;  %v1298_v56 = vpop.permute.xlu0 %1297  ;;  %v519_v63 = vld [vmem:[%s3406_s13 + $0xa0] sm:$0xff] }
 0x23d   : > { %v1441_v13 = vpack.c.bf16 %v1414_v6, %v1413_v9  ;;  %v1383_v14 = vmul.f32 %v1298_v56, %v509_v5  ;;  %v1416_v20 = vadd.f32 %v1384_v52, %v3161_v7  ;;  %v521_v52 = vld [vmem:[%s3406_s13 + $0xb0] sm:$0xff] }
 0x23e   : > { %v1304_v25 = vpop.permute.xlu1 %1303 }
 0x23f   : > { %v1415_v21 = vadd.f32 %v1383_v14, %v3169_v12  ;;  %2679 = vmatprep.mubr.msk.bf16.mxu0 %vm1468_vm2, %v1441_v13  ;;  %v1386_v62 = vmul.f32 %v1304_v25, %v512_v18 }
 0x240   : > { %v1302_v2 = vpop.permute.xlu0 %1301 }
 0x241   : > { %v1442_v26 = vpack.c.bf16 %v1416_v20, %v1415_v21  ;;  %v1385_v58 = vmul.f32 %v1302_v2, %v511_v19  ;;  %v1418_v37 = vadd.f32 %v1386_v62, %v3177_v17  ;;  %v524_v20 = vld [vmem:[%s3406_s13 + $0xc8] sm:$0xff]  ;;  %v523_v21 = vld [vmem:[%s3406_s13 + $0xc0] sm:$0xff] }
 0x242   : > { %v1308_v29 = vpop.permute.xlu1 %1307 }
 0x243   : > { %v1417_v28 = vadd.f32 %v1385_v58, %v3185_v22  ;;  %v1388_v7 = vmul.f32 %v1308_v29, %v514_v31  ;;  %v526_v31 = vld [vmem:[%s3406_s13 + $0xd8] sm:$0xff] }
 0x244   : > { %2680 = vmatmul.mubr.msk.bf16.gmra.mxu0 %vm1468_vm2, %v1442_v26  ;;  %v1306_v12 = vpop.permute.xlu0 %1305 }
 0x245   : > { %v1443_v38 = vpack.c.bf16 %v1418_v37, %v1417_v28  ;;  %v1387_v40 = vmul.f32 %v1306_v12, %v513_v34  ;;  %v1420_v33 = vadd.f32 %v1388_v7, %v3193_v27  ;;  %v525_v34 = vld [vmem:[%s3406_s13 + $0xd0] sm:$0xff] }
 0x246   : > { %v1312_v43 = vpop.permute.xlu1 %1311 }
 0x247   : > { %v1419_v42 = vadd.f32 %v1387_v40, %v3201_v35  ;;  %2683 = vmatprep.mubr.msk.bf16.mxu0 %vm1468_vm2, %v1443_v38  ;;  %v1390_v17 = vmul.f32 %v1312_v43, %v516_v32  ;;  %v528_v38 = vld [vmem:[%s3406_s13 + $0xe8] sm:$0xff]  ;;  %v527_v40 = vld [vmem:[%s3406_s13 + $0xe0] sm:$0xff] }
 0x248   : > { %v1310_v22 = vpop.permute.xlu0 %1309 }
 0x249   : > { %v1444_v44 = vpack.c.bf16 %v1420_v33, %v1419_v42  ;;  %v1389_v49 = vmul.f32 %v1310_v22, %v515_v36  ;;  %v1422_v53 = vadd.f32 %v1390_v17, %v3209_v41  ;;  %v530_v17 = vld [vmem:[%s3406_s13 + $0xf8] sm:$0xff]  ;;  %v529_v22 = vld [vmem:[%s3406_s13 + $0xf0] sm:$0xff] }
 0x24a   : > { %v1316_v45 = vpop.permute.xlu1 %1315 }
 0x24b   : > { %v1421_v57 = vadd.f32 %v1389_v49, %v3217_v47  ;;  %v1392_v27 = vmul.f32 %v1316_v45, %v518_v50 }
 0x24c   : > { %2684 = vmatmul.mubr.msk.bf16.gmra.mxu0 %vm1468_vm2, %v1444_v44  ;;  %v1314_v35 = vpop.permute.xlu0 %1313 }
 0x24d   : > { %v1445_v59 = vpack.c.bf16 %v1422_v53, %v1421_v57  ;;  %v1391_v48 = vmul.f32 %v1314_v35, %v517_v51  ;;  %v1424_v1 = vadd.f32 %v1392_v27, %v3225_v54 }
 0x24e   : > { %v1320_v5 = vpop.permute.xlu1 %1319 }
 0x24f   : > { %v1423_v3 = vadd.f32 %v1391_v48, %v3233_v61  ;;  %2687 = vmatprep.mubr.msk.bf16.mxu0 %vm1468_vm2, %v1445_v59  ;;  %v1394_v41 = vmul.f32 %v1320_v5, %v520_v60 }
 0x250   : > { %v1318_v47 = vpop.permute.xlu0 %1317 }
 0x251   : > { %v1446_v6 = vpack.c.bf16 %v1424_v1, %v1423_v3  ;;  %v1393_v9 = vmul.f32 %v1318_v47, %v519_v63  ;;  %v1426_v56 = vadd.f32 %v1394_v41, %v3241_v4 }
 0x252   : > { %v1324_v14 = vpop.permute.xlu1 %1323 }
 0x253   : > { %v1425_v13 = vadd.f32 %v1393_v9, %v3249_v10  ;;  %v1396_v54 = vmul.f32 %v1324_v14, %v522_v11 }
 0x254   : > { %2688 = vmatmul.mubr.msk.bf16.gmra.mxu0 %vm1468_vm2, %v1446_v6  ;;  %v1322_v61 = vpop.permute.xlu0 %1321 }
 0x255   : > { %v1447_v18 = vpack.c.bf16 %v1426_v56, %v1425_v13  ;;  %v1395_v19 = vmul.f32 %v1322_v61, %v521_v52  ;;  %v1428_v25 = vadd.f32 %v1396_v54, %v3257_v16 }
 0x256   : > { %v1328_v2 = vpop.permute.xlu1 %1327 }
 0x257   : > { %v1427_v62 = vadd.f32 %v1395_v19, %v3265_v23  ;;  %2691 = vmatprep.mubr.msk.bf16.mxu0 %vm1468_vm2, %v1447_v18  ;;  %v1398_v4 = vmul.f32 %v1328_v2, %v524_v20 }
 0x258   : > { %v1326_v10 = vpop.permute.xlu0 %1325 }
 0x259   : > { %v1448_v26 = vpack.c.bf16 %v1428_v25, %v1427_v62  ;;  %v1397_v58 = vmul.f32 %v1326_v10, %v523_v21  ;;  %v1430_v37 = vadd.f32 %v1398_v4, %v3273_v30 }
 0x25a   : > { %v1332_v29 = vpop.permute.xlu1 %1331 }
 0x25b   : > { %v1429_v28 = vadd.f32 %v1397_v58, %v3281_v39  ;;  %v1400_v16 = vmul.f32 %v1332_v29, %v526_v31  ;;  %v3581_v31 = vld [vmem:[%s3748_s7] ss:$0 sm:$0xff] }
 0x25c   : > { %2692 = vmatmul.mubr.msk.bf16.gmra.mxu0 %vm1468_vm2, %v1448_v26  ;;  %v1330_v23 = vpop.permute.xlu0 %1329 }
 0x25d   : > { %v1449_v7 = vpack.c.bf16 %v1430_v37, %v1429_v28  ;;  %v1399_v12 = vmul.f32 %v1330_v23, %v525_v34  ;;  %v1432_v32 = vadd.f32 %v1400_v16, %v3289_v46 }
 0x25e   : > { %v1336_v33 = vpop.permute.xlu1 %1335 }
 0x25f   : > { %v1431_v36 = vadd.f32 %v1399_v12, %v3297_v55  ;;  %2695 = vmatprep.mubr.msk.bf16.mxu0 %vm1468_vm2, %v1449_v7  ;;  %v1402_v30 = vmul.f32 %v1336_v33, %v528_v38 }
 0x260   : > { %v1334_v39 = vpop.permute.xlu0 %1333 }
 0x261   : > { %v1450_v42 = vpack.c.bf16 %v1432_v32, %v1431_v36  ;;  %v1401_v43 = vmul.f32 %v1334_v39, %v527_v40  ;;  %v1434_v44 = vadd.f32 %v1402_v30, %v3305_v0 }
 0x262   : > { %v1340_v50 = vpop.permute.xlu1 %1339 }
 0x263   : > { %v1433_v49 = vadd.f32 %v1401_v43, %v3313_v8  ;;  %v1404_v51 = vmul.f32 %v1340_v50, %v530_v17 }
 0x264   : > { %2696 = vmatmul.mubr.msk.bf16.gmra.mxu0 %vm1468_vm2, %v1450_v42  ;;  %v1338_v46 = vpop.permute.xlu0 %1337 }
 0x265   : > { %v1451_v55 = vpack.c.bf16 %v1434_v44, %v1433_v49  ;;  %v1403_v53 = vmul.f32 %v1338_v46, %v529_v22  ;;  %v1436_v0 = vadd.f32 %v1404_v51, %v3321_v15 }
 0x266   : > { %v2105_v57 = vpop.permute.xlu1 %2104 }
 0x267   : > { %v1435_v8 = vadd.f32 %v1403_v53, %v3329_v24  ;;  %2699 = vmatprep.mubr.msk.bf16.mxu0 %vm1468_vm2, %v1451_v55  ;;  %2199 = vst.msk [vmem:[%s3508_s22 + $0x8] sm:$0xff] %vm1468_vm2, %v2105_v57 }
 0x268   : > { %v2103_v45 = vpop.permute.xlu0 %2102 }
 0x269   : > { %v1452_v27 = vpack.c.bf16 %v1436_v0, %v1435_v8  ;;  %2198 = vst.msk [vmem:[%s3508_s22] sm:$0xff] %vm1468_vm2, %v2103_v45 }
 0x26a   : > { %v2109_v35 = vpop.permute.xlu1 %2108 }
 0x26b   : > { %2201 = vst.msk [vmem:[%s3508_s22 + $0x18] sm:$0xff] %vm1468_vm2, %v2109_v35 }
 0x26c   : > { %2700 = vmatmul.mubr.msk.bf16.gmra.mxu0 %vm1468_vm2, %v1452_v27  ;;  %v2107_v15 = vpop.permute.xlu0 %2106 }
 0x26d   : > { %2200 = vst.msk [vmem:[%s3508_s22 + $0x10] sm:$0xff] %vm1468_vm2, %v2107_v15 }
 0x26e   : > { %v2113_v24 = vpop.permute.xlu1 %2112 }
 0x26f   : > { %2203 = vst.msk [vmem:[%s3508_s22 + $0x28] sm:$0xff] %vm1468_vm2, %v2113_v24 }
 0x270   : > { %v2111_v59 = vpop.permute.xlu0 %2110 }
 0x271   : > { %2202 = vst.msk [vmem:[%s3508_s22 + $0x20] sm:$0xff] %vm1468_vm2, %v2111_v59 }
 0x272   : > { %v2117_v48 = vpop.permute.xlu1 %2116 }
 0x273   : > { %2205 = vst.msk [vmem:[%s3508_s22 + $0x38] sm:$0xff] %vm1468_vm2, %v2117_v48 }
 0x274   : > { %v2115_v60 = vpop.permute.xlu0 %2114 }
 0x275   : > { %2204 = vst.msk [vmem:[%s3508_s22 + $0x30] sm:$0xff] %vm1468_vm2, %v2115_v60 }
 0x276   : > { %v2121_v63 = vpop.permute.xlu1 %2120 }
 0x277   : > { %2207 = vst.msk [vmem:[%s3508_s22 + $0x48] sm:$0xff] %vm1468_vm2, %v2121_v63 }
 0x278   : > { %v2119_v1 = vpop.permute.xlu0 %2118 }
 0x279   : > { %2206 = vst.msk [vmem:[%s3508_s22 + $0x40] sm:$0xff] %vm1468_vm2, %v2119_v1 }
 0x27a   : > { %v2125_v3 = vpop.permute.xlu1 %2124 }
 0x27b   : > { %2209 = vst.msk [vmem:[%s3508_s22 + $0x58] sm:$0xff] %vm1468_vm2, %v2125_v3 }
 0x27c   : > { %v2123_v5 = vpop.permute.xlu0 %2122 }
 0x27d   : > { %2208 = vst.msk [vmem:[%s3508_s22 + $0x50] sm:$0xff] %vm1468_vm2, %v2123_v5 }
 0x27e   : > { %v2129_v41 = vpop.permute.xlu1 %2128 }
 0x27f   : > { %2211 = vst.msk [vmem:[%s3508_s22 + $0x68] sm:$0xff] %vm1468_vm2, %v2129_v41 }
 0x280   : > { %v2127_v47 = vpop.permute.xlu0 %2126 }
 0x281   : > { %2210 = vst.msk [vmem:[%s3508_s22 + $0x60] sm:$0xff] %vm1468_vm2, %v2127_v47 }
 0x282   : > { %v2133_v6 = vpop.permute.xlu1 %2132 }
 0x283   : > { %2213 = vst.msk [vmem:[%s3508_s22 + $0x78] sm:$0xff] %vm1468_vm2, %v2133_v6 }
 0x284   : > { %v2131_v9 = vpop.permute.xlu0 %2130 }
 0x285   : > { %2212 = vst.msk [vmem:[%s3508_s22 + $0x70] sm:$0xff] %vm1468_vm2, %v2131_v9 }
 0x286   : > { %v2137_v11 = vpop.permute.xlu1 %2136 }
 0x287   : > { %2215 = vst.msk [vmem:[%s3508_s22 + $0x88] sm:$0xff] %vm1468_vm2, %v2137_v11 }
 0x288   : > { %v2135_v52 = vpop.permute.xlu0 %2134 }
 0x289   : > { %2214 = vst.msk [vmem:[%s3508_s22 + $0x80] sm:$0xff] %vm1468_vm2, %v2135_v52 }
 0x28a   : > { %v2141_v56 = vpop.permute.xlu1 %2140 }
 0x28b   : > { %2217 = vst.msk [vmem:[%s3508_s22 + $0x98] sm:$0xff] %vm1468_vm2, %v2141_v56 }
 0x28c   : > { %v2139_v13 = vpop.permute.xlu0 %2138 }
 0x28d   : > { %2216 = vst.msk [vmem:[%s3508_s22 + $0x90] sm:$0xff] %vm1468_vm2, %v2139_v13 }
 0x28e   : > { %v2145_v14 = vpop.permute.xlu1 %2144 }
 0x28f   : > { %2219 = vst.msk [vmem:[%s3508_s22 + $0xa8] sm:$0xff] %vm1468_vm2, %v2145_v14 }
 0x290   : > { %v2143_v54 = vpop.permute.xlu0 %2142 }
 0x291   : > { %2218 = vst.msk [vmem:[%s3508_s22 + $0xa0] sm:$0xff] %vm1468_vm2, %v2143_v54 }
 0x292   : > { %v2149_v61 = vpop.permute.xlu1 %2148 }
 0x293   : > { %2221 = vst.msk [vmem:[%s3508_s22 + $0xb8] sm:$0xff] %vm1468_vm2, %v2149_v61 }
 0x294   : > { %v2147_v18 = vpop.permute.xlu0 %2146 }
 0x295   : > { %2220 = vst.msk [vmem:[%s3508_s22 + $0xb0] sm:$0xff] %vm1468_vm2, %v2147_v18 }
 0x296   : > { %v2153_v19 = vpop.permute.xlu1 %2152 }
 0x297   : > { %2223 = vst.msk [vmem:[%s3508_s22 + $0xc8] sm:$0xff] %vm1468_vm2, %v2153_v19 }
 0x298   : > { %v2151_v20 = vpop.permute.xlu0 %2150 }
 0x299   : > { %2222 = vst.msk [vmem:[%s3508_s22 + $0xc0] sm:$0xff] %vm1468_vm2, %v2151_v20 }
 0x29a   : > { %v2157_v21 = vpop.permute.xlu1 %2156 }
 0x29b   : > { %2225 = vst.msk [vmem:[%s3508_s22 + $0xd8] sm:$0xff] %vm1468_vm2, %v2157_v21 }
 0x29c   : > { %v2155_v25 = vpop.permute.xlu0 %2154 }
 0x29d   : > { %2224 = vst.msk [vmem:[%s3508_s22 + $0xd0] sm:$0xff] %vm1468_vm2, %v2155_v25 }
 0x29e   : > { %v2161_v62 = vpop.permute.xlu1 %2160 }
 0x29f   : > { %2227 = vst.msk [vmem:[%s3508_s22 + $0xe8] sm:$0xff] %vm1468_vm2, %v2161_v62 }
 0x2a0   : > { %v2159_v2 = vpop.permute.xlu0 %2158 }
 0x2a1   : > { %2226 = vst.msk [vmem:[%s3508_s22 + $0xe0] sm:$0xff] %vm1468_vm2, %v2159_v2 }
 0x2a2   : > { %v2165_v4 = vpop.permute.xlu1 %2164 }
 0x2a3   : > { %2229 = vst.msk [vmem:[%s3508_s22 + $0xf8] sm:$0xff] %vm1468_vm2, %v2165_v4 }
 0x2a4   : > { %v2163_v10 = vpop.permute.xlu0 %2162 }
 0x2a5   : > { %2228 = vst.msk [vmem:[%s3508_s22 + $0xf0] sm:$0xff] %vm1468_vm2, %v2163_v10 }
 0x2f4   : > { %v2673_v26 = vpop.f32.mrf.mxu0 }
 0x2f5   : > { %v1560_v29 = vadd.f32 %v2673_v26, %v3581_v31 }
 0x2f6   : > { %v1551_v58 = vpop.f32.mrf.mxu0 }
 0x2f7   : > { %v1552_v37 = vadd.f32 %v3581_v31, %v1551_v58  ;;  %v1680_v32 = vmax.f32 %v1560_v29, 0.0 }
 0x2f8   : > { %v2674_v34 = vpop.f32.mrf.mxu0 }
 0x2f9   : > { %v1563_v28 = vadd.f32 %v2674_v34, %v3581_v31  ;;  %v1678_v38 = vmax.f32 %v1552_v37, 0.0 }
 0x2fa   : > { %v1554_v16 = vpop.f32.mrf.mxu0 }
 0x2fb   : > { %v1555_v23 = vadd.f32 %v3581_v31, %v1554_v16  ;;  %v1681_v7 = vmax.f32 %v1563_v28, 0.0 }
 0x2fc   : > { %v2677_v12 = vpop.f32.mrf.mxu0 }
 0x2fd   : > { %v1679_v40 = vmax.f32 %v1555_v23, 0.0  ;;  %v1711_v30 = vpack.c.bf16 %v1681_v7, %v1680_v32  ;;  %v1576_v17 = vadd.f32 %v2677_v12, %v3581_v31 }
 0x2fe   : > { %v1567_v36 = vpop.f32.mrf.mxu0 }
 0x2ff   : > { %v1710_v33 = vpack.c.bf16 %v1679_v40, %v1678_v38  ;;  %v1568_v42 = vadd.f32 %v3581_v31, %v1567_v36  ;;  %v1684_v55 = vmax.f32 %v1576_v17, 0.0 }
 0x300   : > { %v2678_v39 = vpop.f32.mrf.mxu0 }
 0x301   : > { %v1579_v43 = vadd.f32 %v2678_v39, %v3581_v31  ;;  %2711 = vmatprep.mubr.msk.bf16.mxu1 %vm827_vm1, %v1710_v33  ;;  %v1682_v51 = vmax.f32 %v1568_v42, 0.0 }
 0x302   : > { %v1570_v22 = vpop.f32.mrf.mxu0  ;;  %2712 = vmatmul.mubr.msk.bf16.vlgmr.msra.gmra.mxu1 %vm827_vm1, %v1711_v30 }
 0x303   : > { %v1571_v44 = vadd.f32 %v3581_v31, %v1570_v22  ;;  %v1685_v49 = vmax.f32 %v1579_v43, 0.0 }
 0x304   : > { %v2681_v50 = vpop.f32.mrf.mxu0 }
 0x305   : > { %v1683_v46 = vmax.f32 %v1571_v44, 0.0  ;;  %v1713_v8 = vpack.c.bf16 %v1685_v49, %v1684_v55  ;;  %v1592_v35 = vadd.f32 %v2681_v50, %v3581_v31 }
 0x306   : > { %v1583_v53 = vpop.f32.mrf.mxu0 }
 0x307   : > { %v1712_v0 = vpack.c.bf16 %v1683_v46, %v1682_v51  ;;  %v1584_v45 = vadd.f32 %v3581_v31, %v1583_v53  ;;  %v1688_v1 = vmax.f32 %v1592_v35, 0.0 }
 0x308   : > { %v2682_v57 = vpop.f32.mrf.mxu0 }
 0x309   : > { %v1595_v27 = vadd.f32 %v2682_v57, %v3581_v31  ;;  %2715 = vmatprep.mubr.msk.bf16.mxu1 %vm827_vm1, %v1712_v0  ;;  %v1686_v60 = vmax.f32 %v1584_v45, 0.0 }
 0x30a   : > { %v1586_v15 = vpop.f32.mrf.mxu0  ;;  %2716 = vmatmul.mubr.msk.bf16.gmra.mxu1 %vm827_vm1, %v1713_v8 }
 0x30b   : > { %v1587_v24 = vadd.f32 %v3581_v31, %v1586_v15  ;;  %v1689_v59 = vmax.f32 %v1595_v27, 0.0 }
 0x30c   : > { %v2685_v48 = vpop.f32.mrf.mxu0 }
 0x30d   : > { %v1687_v63 = vmax.f32 %v1587_v24, 0.0  ;;  %v1715_v41 = vpack.c.bf16 %v1689_v59, %v1688_v1  ;;  %v1608_v11 = vadd.f32 %v2685_v48, %v3581_v31 }
 0x30e   : > { %v1599_v3 = vpop.f32.mrf.mxu0 }
 0x30f   : > { %v1714_v5 = vpack.c.bf16 %v1687_v63, %v1686_v60  ;;  %v1600_v6 = vadd.f32 %v3581_v31, %v1599_v3  ;;  %v1692_v18 = vmax.f32 %v1608_v11, 0.0 }
 0x310   : > { %v2686_v47 = vpop.f32.mrf.mxu0 }
 0x311   : > { %v1611_v9 = vadd.f32 %v2686_v47, %v3581_v31  ;;  %2719 = vmatprep.mubr.msk.bf16.mxu1 %vm827_vm1, %v1714_v5  ;;  %v1690_v54 = vmax.f32 %v1600_v6, 0.0 }
 0x312   : > { %v1602_v52 = vpop.f32.mrf.mxu0  ;;  %2720 = vmatmul.mubr.msk.bf16.gmra.mxu1 %vm827_vm1, %v1715_v41 }
 0x313   : > { %v1603_v56 = vadd.f32 %v3581_v31, %v1602_v52  ;;  %v1693_v13 = vmax.f32 %v1611_v9, 0.0 }
 0x314   : > { %v2689_v14 = vpop.f32.mrf.mxu0 }
 0x315   : > { %v1691_v61 = vmax.f32 %v1603_v56, 0.0  ;;  %v1717_v21 = vpack.c.bf16 %v1693_v13, %v1692_v18  ;;  %v1624_v4 = vadd.f32 %v2689_v14, %v3581_v31  ;;  %v3634_v56 = vld [vmem:[%s3750_s9] ss:$0 sm:$0xff] }
 0x316   : > { %v1615_v19 = vpop.f32.mrf.mxu0 }
 0x317   : > { %v1716_v20 = vpack.c.bf16 %v1691_v61, %v1690_v54  ;;  %v1616_v62 = vadd.f32 %v3581_v31, %v1615_v19  ;;  %v1696_v29 = vmax.f32 %v1624_v4, 0.0 }
 0x318   : > { %v2690_v25 = vpop.f32.mrf.mxu0 }
 0x319   : > { %v1627_v2 = vadd.f32 %v2690_v25, %v3581_v31  ;;  %2723 = vmatprep.mubr.msk.bf16.mxu1 %vm827_vm1, %v1716_v20  ;;  %v1694_v37 = vmax.f32 %v1616_v62, 0.0 }
 0x31a   : > { %v1618_v10 = vpop.f32.mrf.mxu0  ;;  %2724 = vmatmul.mubr.msk.bf16.gmra.mxu1 %vm827_vm1, %v1717_v21 }
 0x31b   : > { %v1619_v26 = vadd.f32 %v3581_v31, %v1618_v10  ;;  %v1697_v58 = vmax.f32 %v1627_v2, 0.0 }
 0x31c   : > { %v2693_v34 = vpop.f32.mrf.mxu0 }
 0x31d   : > { %v1695_v28 = vmax.f32 %v1619_v26, 0.0  ;;  %v1719_v7 = vpack.c.bf16 %v1697_v58, %v1696_v29  ;;  %v1640_v32 = vadd.f32 %v2693_v34, %v3581_v31 }
 0x31e   : > { %v1631_v16 = vpop.f32.mrf.mxu0 }
 0x31f   : > { %v1718_v23 = vpack.c.bf16 %v1695_v28, %v1694_v37  ;;  %v1632_v38 = vadd.f32 %v3581_v31, %v1631_v16  ;;  %v1700_v17 = vmax.f32 %v1640_v32, 0.0 }
 0x320   : > { %v2694_v12 = vpop.f32.mrf.mxu0 }
 0x321   : > { %v1643_v40 = vadd.f32 %v2694_v12, %v3581_v31  ;;  %2727 = vmatprep.mubr.msk.bf16.mxu1 %vm827_vm1, %v1718_v23  ;;  %v1698_v42 = vmax.f32 %v1632_v38, 0.0 }
 0x322   : > { %v1634_v36 = vpop.f32.mrf.mxu0  ;;  %2728 = vmatmul.mubr.msk.bf16.gmra.mxu1 %vm827_vm1, %v1719_v7 }
 0x323   : > { %v1635_v33 = vadd.f32 %v3581_v31, %v1634_v36  ;;  %v1701_v30 = vmax.f32 %v1643_v40, 0.0 }
 0x324   : > { %v2697_v39 = vpop.f32.mrf.mxu0 }
 0x325   : > { %v1699_v43 = vmax.f32 %v1635_v33, 0.0  ;;  %v1721_v49 = vpack.c.bf16 %v1701_v30, %v1700_v17  ;;  %v1656_v55 = vadd.f32 %v2697_v39, %v3581_v31 }
 0x326   : > { %v1647_v22 = vpop.f32.mrf.mxu0 }
 0x327   : > { %v1720_v44 = vpack.c.bf16 %v1699_v43, %v1698_v42  ;;  %v1648_v51 = vadd.f32 %v3581_v31, %v1647_v22  ;;  %v1704_v35 = vmax.f32 %v1656_v55, 0.0 }
 0x328   : > { %v2698_v50 = vpop.f32.mrf.mxu0 }
 0x329   : > { %v1659_v46 = vadd.f32 %v2698_v50, %v3581_v31  ;;  %2731 = vmatprep.mubr.msk.bf16.mxu1 %vm827_vm1, %v1720_v44  ;;  %v1702_v45 = vmax.f32 %v1648_v51, 0.0 }
 0x32a   : > { %v1650_v53 = vpop.f32.mrf.mxu0  ;;  %2732 = vmatmul.mubr.msk.bf16.gmra.mxu1 %vm827_vm1, %v1721_v49 }
 0x32b   : > { %v1651_v0 = vadd.f32 %v3581_v31, %v1650_v53  ;;  %v1705_v8 = vmax.f32 %v1659_v46, 0.0 }
 0x32c   : > { %v2701_v57 = vpop.f32.mrf.mxu0 }
 0x32d   : > { %v1703_v27 = vmax.f32 %v1651_v0, 0.0  ;;  %v1723_v59 = vpack.c.bf16 %v1705_v8, %v1704_v35  ;;  %v1672_v1 = vadd.f32 %v2701_v57, %v3581_v31 }
 0x32e   : > { %v1663_v15 = vpop.f32.mrf.mxu0 }
 0x32f   : > { %v1722_v24 = vpack.c.bf16 %v1703_v27, %v1702_v45  ;;  %v1664_v60 = vadd.f32 %v3581_v31, %v1663_v15  ;;  %v1708_v9 = vmax.f32 %v1672_v1, 0.0 }
 0x330   : > { %v2702_v48 = vpop.f32.mrf.mxu0 }
 0x331   : > { %v1675_v63 = vadd.f32 %v2702_v48, %v3581_v31  ;;  %2735 = vmatprep.mubr.msk.bf16.mxu1 %vm827_vm1, %v1722_v24  ;;  %v1706_v47 = vmax.f32 %v1664_v60, 0.0 }
 0x332   : > { %v1666_v3 = vpop.f32.mrf.mxu0  ;;  %2736 = vmatmul.mubr.msk.bf16.gmra.mxu1 %vm827_vm1, %v1723_v59 }
 0x333   : > { %v1667_v5 = vadd.f32 %v3581_v31, %v1666_v3  ;;  %v1709_v41 = vmax.f32 %v1675_v63, 0.0 }
 0x335   : > { %v1707_v6 = vmax.f32 %v1667_v5, 0.0  ;;  %v1725_v52 = vpack.c.bf16 %v1709_v41, %v1708_v9 }
 0x337   : > { %v1724_v11 = vpack.c.bf16 %v1707_v6, %v1706_v47 }
 0x339   : > { %2739 = vmatprep.mubr.msk.bf16.mxu1 %vm827_vm1, %v1724_v11 }
 0x33a   : > { %2740 = vmatmul.mubr.msk.bf16.gmra.mxu1 %vm827_vm1, %v1725_v52 }
 0x3c2   : > { %v2713_v13 = vpop.f32.mrf.mxu1 }
 0x3c3   : > { %v1856_v14 = vadd.f32 %v2713_v13, %v3634_v56 }
 0x3c4   : > { %v1847_v31 = vpop.f32.mrf.mxu1 }
 0x3c5   : > { %v1976_v54 = vmax.f32 %v1856_v14, 0.0  ;;  %v1848_v61 = vadd.f32 %v3634_v56, %v1847_v31 }
 0x3c6   : > { %v2714_v18 = vpop.f32.mrf.mxu1 }
 0x3c7   : > { %2008 = vst.msk [vmem:[%s3641_s29 + $0x10] sm:$0xff] %vm570_vm0, %v1976_v54  ;;  %v1974_v19 = vmax.f32 %v1848_v61, 0.0  ;;  %v1859_v20 = vadd.f32 %v2714_v18, %v3634_v56 }
 0x3c8   : > { %v1850_v21 = vpop.f32.mrf.mxu1 }
 0x3c9   : > { %2006 = vst.msk [vmem:[%s3641_s29] sm:$0xff] %vm570_vm0, %v1974_v19  ;;  %v1977_v25 = vmax.f32 %v1859_v20, 0.0  ;;  %v1851_v62 = vadd.f32 %v3634_v56, %v1850_v21 }
 0x3ca   : > { %v2717_v2 = vpop.f32.mrf.mxu1 }
 0x3cb   : > { %2009 = vst.msk [vmem:[%s3641_s29 + $0x18] sm:$0xff] %vm570_vm0, %v1977_v25  ;;  %v1975_v4 = vmax.f32 %v1851_v62, 0.0  ;;  %v1872_v10 = vadd.f32 %v2717_v2, %v3634_v56 }
 0x3cc   : > { %v1863_v26 = vpop.f32.mrf.mxu1 }
 0x3cd   : > { %2007 = vst.msk [vmem:[%s3641_s29 + $0x8] sm:$0xff] %vm570_vm0, %v1975_v4  ;;  %v1980_v58 = vmax.f32 %v1872_v10, 0.0  ;;  %v1864_v34 = vadd.f32 %v3634_v56, %v1863_v26 }
 0x3ce   : > { %v2718_v37 = vpop.f32.mrf.mxu1 }
 0x3cf   : > { %2012 = vst.msk [vmem:[%s3641_s29 + $0x30] sm:$0xff] %vm570_vm0, %v1980_v58  ;;  %v1978_v28 = vmax.f32 %v1864_v34, 0.0  ;;  %v1875_v29 = vadd.f32 %v2718_v37, %v3634_v56 }
 0x3d0   : > { %v1866_v16 = vpop.f32.mrf.mxu1 }
 0x3d1   : > { %2010 = vst.msk [vmem:[%s3641_s29 + $0x20] sm:$0xff] %vm570_vm0, %v1978_v28  ;;  %v1981_v23 = vmax.f32 %v1875_v29, 0.0  ;;  %v1867_v7 = vadd.f32 %v3634_v56, %v1866_v16 }
 0x3d2   : > { %v2721_v12 = vpop.f32.mrf.mxu1 }
 0x3d3   : > { %2013 = vst.msk [vmem:[%s3641_s29 + $0x38] sm:$0xff] %vm570_vm0, %v1981_v23  ;;  %v1979_v38 = vmax.f32 %v1867_v7, 0.0  ;;  %v1888_v40 = vadd.f32 %v2721_v12, %v3634_v56 }
 0x3d4   : > { %v1879_v32 = vpop.f32.mrf.mxu1 }
 0x3d5   : > { %2011 = vst.msk [vmem:[%s3641_s29 + $0x28] sm:$0xff] %vm570_vm0, %v1979_v38  ;;  %v1984_v36 = vmax.f32 %v1888_v40, 0.0  ;;  %v1880_v33 = vadd.f32 %v3634_v56, %v1879_v32 }
 0x3d6   : > { %v2722_v30 = vpop.f32.mrf.mxu1 }
 0x3d7   : > { %2016 = vst.msk [vmem:[%s3641_s29 + $0x50] sm:$0xff] %vm570_vm0, %v1984_v36  ;;  %v1982_v39 = vmax.f32 %v1880_v33, 0.0  ;;  %v1891_v42 = vadd.f32 %v2722_v30, %v3634_v56 }
 0x3d8   : > { %v1882_v43 = vpop.f32.mrf.mxu1 }
 0x3d9   : > { %2014 = vst.msk [vmem:[%s3641_s29 + $0x40] sm:$0xff] %vm570_vm0, %v1982_v39  ;;  %v1985_v17 = vmax.f32 %v1891_v42, 0.0  ;;  %v1883_v22 = vadd.f32 %v3634_v56, %v1882_v43 }
 0x3da   : > { %v2725_v44 = vpop.f32.mrf.mxu1 }
 0x3db   : > { %2017 = vst.msk [vmem:[%s3641_s29 + $0x58] sm:$0xff] %vm570_vm0, %v1985_v17  ;;  %v1983_v49 = vmax.f32 %v1883_v22, 0.0  ;;  %v1904_v50 = vadd.f32 %v2725_v44, %v3634_v56 }
 0x3dc   : > { %v1895_v51 = vpop.f32.mrf.mxu1 }
 0x3dd   : > { %2015 = vst.msk [vmem:[%s3641_s29 + $0x48] sm:$0xff] %vm570_vm0, %v1983_v49  ;;  %v1988_v46 = vmax.f32 %v1904_v50, 0.0  ;;  %v1896_v55 = vadd.f32 %v3634_v56, %v1895_v51 }
 0x3de   : > { %v2726_v53 = vpop.f32.mrf.mxu1 }
 0x3df   : > { %2020 = vst.msk [vmem:[%s3641_s29 + $0x70] sm:$0xff] %vm570_vm0, %v1988_v46  ;;  %v1986_v0 = vmax.f32 %v1896_v55, 0.0  ;;  %v1907_v8 = vadd.f32 %v2726_v53, %v3634_v56 }
 0x3e0   : > { %v1898_v57 = vpop.f32.mrf.mxu1 }
 0x3e1   : > { %2018 = vst.msk [vmem:[%s3641_s29 + $0x60] sm:$0xff] %vm570_vm0, %v1986_v0  ;;  %v1989_v45 = vmax.f32 %v1907_v8, 0.0  ;;  %v1899_v27 = vadd.f32 %v3634_v56, %v1898_v57 }
 0x3e2   : > { %v2729_v35 = vpop.f32.mrf.mxu1 }
 0x3e3   : > { %2021 = vst.msk [vmem:[%s3641_s29 + $0x78] sm:$0xff] %vm570_vm0, %v1989_v45  ;;  %v1987_v15 = vmax.f32 %v1899_v27, 0.0  ;;  %v1920_v24 = vadd.f32 %v2729_v35, %v3634_v56 }
 0x3e4   : > { %v1911_v59 = vpop.f32.mrf.mxu1 }
 0x3e5   : > { %2019 = vst.msk [vmem:[%s3641_s29 + $0x68] sm:$0xff] %vm570_vm0, %v1987_v15  ;;  %v1992_v48 = vmax.f32 %v1920_v24, 0.0  ;;  %v1912_v60 = vadd.f32 %v3634_v56, %v1911_v59 }
 0x3e6   : > { %v2730_v63 = vpop.f32.mrf.mxu1 }
 0x3e7   : > { %2024 = vst.msk [vmem:[%s3641_s29 + $0x90] sm:$0xff] %vm570_vm0, %v1992_v48  ;;  %v1990_v1 = vmax.f32 %v1912_v60, 0.0  ;;  %v1923_v3 = vadd.f32 %v2730_v63, %v3634_v56 }
 0x3e8   : > { %v1914_v5 = vpop.f32.mrf.mxu1 }
 0x3e9   : > { %2022 = vst.msk [vmem:[%s3641_s29 + $0x80] sm:$0xff] %vm570_vm0, %v1990_v1  ;;  %v1993_v41 = vmax.f32 %v1923_v3, 0.0  ;;  %v1915_v47 = vadd.f32 %v3634_v56, %v1914_v5 }
 0x3ea   : > { %v2733_v6 = vpop.f32.mrf.mxu1 }
 0x3eb   : > { %2025 = vst.msk [vmem:[%s3641_s29 + $0x98] sm:$0xff] %vm570_vm0, %v1993_v41  ;;  %v1991_v9 = vmax.f32 %v1915_v47, 0.0  ;;  %v1936_v11 = vadd.f32 %v2733_v6, %v3634_v56 }
 0x3ec   : > { %v1927_v52 = vpop.f32.mrf.mxu1 }
 0x3ed   : > { %2023 = vst.msk [vmem:[%s3641_s29 + $0x88] sm:$0xff] %vm570_vm0, %v1991_v9  ;;  %v1996_v13 = vmax.f32 %v1936_v11, 0.0  ;;  %v1928_v14 = vadd.f32 %v3634_v56, %v1927_v52 }
 0x3ee   : > { %v2734_v31 = vpop.f32.mrf.mxu1 }
 0x3ef   : > { %2028 = vst.msk [vmem:[%s3641_s29 + $0xb0] sm:$0xff] %vm570_vm0, %v1996_v13  ;;  %v1994_v54 = vmax.f32 %v1928_v14, 0.0  ;;  %v1939_v61 = vadd.f32 %v2734_v31, %v3634_v56 }
 0x3f0   : > { %v1930_v18 = vpop.f32.mrf.mxu1 }
 0x3f1   : > { %2026 = vst.msk [vmem:[%s3641_s29 + $0xa0] sm:$0xff] %vm570_vm0, %v1994_v54  ;;  %v1997_v19 = vmax.f32 %v1939_v61, 0.0  ;;  %v1931_v20 = vadd.f32 %v3634_v56, %v1930_v18 }
 0x3f2   : > { %v2737_v21 = vpop.f32.mrf.mxu1 }
 0x3f3   : > { %2029 = vst.msk [vmem:[%s3641_s29 + $0xb8] sm:$0xff] %vm570_vm0, %v1997_v19  ;;  %v1995_v25 = vmax.f32 %v1931_v20, 0.0  ;;  %v1952_v62 = vadd.f32 %v2737_v21, %v3634_v56 }
 0x3f4   : > { %v1943_v2 = vpop.f32.mrf.mxu1 }
 0x3f5   : > { %2027 = vst.msk [vmem:[%s3641_s29 + $0xa8] sm:$0xff] %vm570_vm0, %v1995_v25  ;;  %v2000_v4 = vmax.f32 %v1952_v62, 0.0  ;;  %v1944_v10 = vadd.f32 %v3634_v56, %v1943_v2 }
 0x3f6   : > { %v2738_v26 = vpop.f32.mrf.mxu1 }
 0x3f7   : > { %2032 = vst.msk [vmem:[%s3641_s29 + $0xd0] sm:$0xff] %vm570_vm0, %v2000_v4  ;;  %v1998_v58 = vmax.f32 %v1944_v10, 0.0  ;;  %v1955_v34 = vadd.f32 %v2738_v26, %v3634_v56 }
 0x3f8   : > { %v1946_v37 = vpop.f32.mrf.mxu1 }
 0x3f9   : > { %2030 = vst.msk [vmem:[%s3641_s29 + $0xc0] sm:$0xff] %vm570_vm0, %v1998_v58  ;;  %v2001_v28 = vmax.f32 %v1955_v34, 0.0  ;;  %v1947_v29 = vadd.f32 %v3634_v56, %v1946_v37 }
 0x3fa   : > { %v2741_v16 = vpop.f32.mrf.mxu1 }
 0x3fb   : > { %2033 = vst.msk [vmem:[%s3641_s29 + $0xd8] sm:$0xff] %vm570_vm0, %v2001_v28  ;;  %v1999_v23 = vmax.f32 %v1947_v29, 0.0  ;;  %v1968_v7 = vadd.f32 %v2741_v16, %v3634_v56 }
 0x3fc   : > { %v1959_v12 = vpop.f32.mrf.mxu1 }
 0x3fd   : > { %2031 = vst.msk [vmem:[%s3641_s29 + $0xc8] sm:$0xff] %vm570_vm0, %v1999_v23  ;;  %v2004_v38 = vmax.f32 %v1968_v7, 0.0  ;;  %v1960_v40 = vadd.f32 %v3634_v56, %v1959_v12 }
 0x3fe   : > { %v2742_v32 = vpop.f32.mrf.mxu1 }
 0x3ff   : > { %2036 = vst.msk [vmem:[%s3641_s29 + $0xf0] sm:$0xff] %vm570_vm0, %v2004_v38  ;;  %v2002_v36 = vmax.f32 %v1960_v40, 0.0  ;;  %v1971_v33 = vadd.f32 %v2742_v32, %v3634_v56 }
 0x400   : > { %v1962_v30 = vpop.f32.mrf.mxu1 }
 0x401   : > { %2034 = vst.msk [vmem:[%s3641_s29 + $0xe0] sm:$0xff] %vm570_vm0, %v2002_v36  ;;  %v2005_v39 = vmax.f32 %v1971_v33, 0.0  ;;  %v1963_v42 = vadd.f32 %v3634_v56, %v1962_v30 }
 0x403   : > { %2037 = vst.msk [vmem:[%s3641_s29 + $0xf8] sm:$0xff] %vm570_vm0, %v2005_v39  ;;  %v2003_v43 = vmax.f32 %v1963_v42, 0.0 }
 0x405   : > { %2035 = vst.msk [vmem:[%s3641_s29 + $0xe8] sm:$0xff] %vm570_vm0, %v2003_v43 }
 0x406 PF: > { %s23_s21 = sadd.s32 1, %s2845_s21  }
 0x407   : > { %p20_p4 = scmp.ge.s32.totalorder %s23_s21, 4  }
 0x409   :  { %22 = sbr.rel (!%p20_p4) target bundleno = 1 (0x1), region = 117 }

</bundles_post_ra>
